<compile_context>
chip_gen: v7x
topology: tpu7x:2x2x1
jax: 0.10.0
libtpu: 0.0.40
codegen_flags: <defaults>
</compile_context>

<pallas_src>
import functools

import jax
import jax.numpy as jnp
from jax.experimental import pallas as pl
from jax.experimental.pallas import tpu as pltpu

NEG_SLOPE = 0.01           # PyTorch LeakyReLU default
OBS_DIM = 391
PROPRIO = 133
HEIGHT_PER_FOOT = 52
N_FEET = 4
PRIV = 50
ACTOR_OUT = 16
CRITIC_OUT = 1

# ---------------- dense-packed weight slab layout (bf16, 1792 x 512) ----------------
# row group 0    (   0: 256): HBD1 @ (0,0)      | HBD2 @ (0,256)
# row group 1    ( 256: 512): HBD3 @ (256,0)    | AW2  @ (256,256)
# row group 2    ( 512: 768): W1_PAIR0 (512 wide)
# row group 3    ( 768:1024): W1_PAIR1 (512 wide)
# row group 4    (1024:1280): W1_PROP  (512 wide)
# row group 5    (1280:1536): AW3 @ (1280,0) | CW2 @ (1280,128) | HEAD @ (1280,256)
#                             | PW1 @ (1280,384) ; PW2 @ (1408,384)
# row group 6    (1536:1664): W1_PRIV (512 wide)
# row group 7    (1664:1792): PW3 @ (1664,0)
HBD1_R, HBD1_C = 0, 0          # block-diag(HW1, HW1), 256x256
HBD2_R, HBD2_C = 0, 256        # block-diag(HW2, HW2)
HBD3_R, HBD3_C = 256, 0        # block-diag(HW3, HW3)
AW2_R, AW2_C = 256, 256        # actor layer 2 (256->160), 256x256 block
W1P0_R = 512                   # fused layer-1 rows for feet pair (0,1), 256x512
W1P1_R = 768                   # fused layer-1 rows for feet pair (2,3), 256x512
W1PROP_R = 1024                # fused layer-1 rows for proprioception, 256x512
AW3_R, AW3_C = 1280, 0         # actor layer 3 (160->128), 256x128 block
CW2_R, CW2_C = 1280, 128       # critic layer 2 (256->128), 256x128 block
HEAD_R, HEAD_C = 1280, 256     # merged head: rows 0:128 AW4 (->16), rows 128:256 CW3 (->lane16)
PW1_R, PW1_C = 1280, 384       # priv encoder layer 1 (50->64), 128x128 block
PW2_R, PW2_C = 1408, 384       # priv encoder layer 2 (64->32)
W1PRIV_R = 1536                # fused layer-1 rows for priv encoding, 128x512
PW3_R, PW3_C = 1664, 0         # priv encoder layer 3 (32->24)
W_SLAB_ROWS = 1792
W_SLAB_COLS = 512

# ---------------- bias slab row indices (f32, 16 x 512) ----------------
B_H1, B_H2, B_H3 = 0, 1, 2     # duplicated at lanes 0:* and 128:* (pair layout)
B_P1, B_P2, B_P3 = 3, 4, 5
B_L1 = 6                       # fused [actor(256) | critic(256)] layer-1 bias
B_A2, B_A3 = 7, 8
B_C2 = 9
B_OUT = 10                     # merged head bias: actor 0:16, critic @ lane 16
B_SLAB_ROWS = 16

# padded MACs per (padded) batch row actually executed by the kernel
_PADDED_MACS_PER_ROW = (
    2 * 3 * 256 * 256          # height encoder, 2 pairs x 3 layers x 256x256
    + 3 * 128 * 128            # priv encoder
    + (256 + 128 + 2 * 256) * 512   # fused layer 1 partial matmuls
    + 256 * 256                # actor layer 2
    + 2 * 256 * 128            # actor layer 3 + critic layer 2
    + 256 * 128                # merged head
)


def _round_up(x, m):
    return ((x + m - 1) // m) * m


# ----------------------------------------------------------------------------
# Pallas kernel
# ----------------------------------------------------------------------------
def teacher_kernel(heights_ref, priv_ref, prop_ref, w_ref, b_ref, out_ref, *, tile_m):
    tm = tile_m

    def wv(r0, c0, rows, cols):
        return w_ref[r0:r0 + rows, c0:c0 + cols]          # static, tile-aligned view

    def bv(row, cols):
        return b_ref[row:row + 1, 0:cols]                 # (1, cols) f32

    def dot(x, wm):
        return jnp.dot(x, wm, preferred_element_type=jnp.float32)

    def act(z):
        # LeakyReLU(0.01) in f32, then keep the activation in bf16 for the next MXU op.
        return jnp.where(z > 0, z, NEG_SLOPE * z).astype(jnp.bfloat16)

    # ---- height encoder: both foot pairs at once, block-diag 256-wide weights ----
    h = heights_ref[...].reshape(2 * tm, 256)             # (2*tm, 256) bf16
    h = act(dot(h, wv(HBD1_R, HBD1_C, 256, 256)) + bv(B_H1, 256))
    h = act(dot(h, wv(HBD2_R, HBD2_C, 256, 256)) + bv(B_H2, 256))
    feet = (dot(h, wv(HBD3_R, HBD3_C, 256, 256)) + bv(B_H3, 256)).astype(jnp.bfloat16)
    feet = feet.reshape(2, tm, 256)                       # pair p: enc(foot 2p)@0:24, enc(foot 2p+1)@128:152

    # ---- privilege encoder ----
    p = priv_ref[...]
    p = act(dot(p, wv(PW1_R, PW1_C, 128, 128)) + bv(B_P1, 128))
    p = act(dot(p, wv(PW2_R, PW2_C, 128, 128)) + bv(B_P2, 128))
    penc = (dot(p, wv(PW3_R, PW3_C, 128, 128)) + bv(B_P3, 128)).astype(jnp.bfloat16)

    # ---- fused actor|critic layer 1 via partial-matmul over concat segments ----
    z1 = dot(prop_ref[...], wv(W1PROP_R, 0, 256, 512))
    z1 = z1 + dot(penc, wv(W1PRIV_R, 0, 128, 512))
    z1 = z1 + dot(feet[0], wv(W1P0_R, 0, 256, 512))
    z1 = z1 + dot(feet[1], wv(W1P1_R, 0, 256, 512))
    z1 = act(z1 + bv(B_L1, 512))                          # (tm, 512) bf16

    a = z1[:, 0:256]                                      # actor path
    c = z1[:, 256:512]                                    # critic path
    a = act(dot(a, wv(AW2_R, AW2_C, 256, 256)) + bv(B_A2, 256))   # true 160 lanes
    a = act(dot(a, wv(AW3_R, AW3_C, 256, 128)) + bv(B_A3, 128))   # 128 lanes
    c = act(dot(c, wv(CW2_R, CW2_C, 256, 128)) + bv(B_C2, 128))   # 128 lanes

    # ---- merged head: one K=256 push; actor in lanes 0:16, critic at lane 16 ----
    ac = jnp.concatenate([a, c], axis=-1)                 # (tm, 256) bf16, lane-aligned
    out_ref[...] = dot(ac, wv(HEAD_R, HEAD_C, 256, 128)) + bv(B_OUT, 128)


# ----------------------------------------------------------------------------
# Parameter init / packing (wrapper side, done once)
# ----------------------------------------------------------------------------
def init_linear(key, fan_in, fan_out):
    """Deterministic PyTorch-style Linear init: U(-1/sqrt(fan_in), 1/sqrt(fan_in))."""
    kw, kb = jax.random.split(key)
    bound = 1.0 / (fan_in ** 0.5)
    wmat = jax.random.uniform(kw, (fan_in, fan_out), jnp.float32, -bound, bound)
    b = jax.random.uniform(kb, (1, fan_out), jnp.float32, -bound, bound)
    return wmat, b


def init_params(seed=0):
    key = jax.random.PRNGKey(seed)
    dims = [
        (52, 80), (80, 60), (60, 24),                    # height encoder
        (50, 64), (64, 32), (32, 24),                    # privilege encoder
        (253, 256), (256, 160), (160, 128), (128, 16),   # actor
        (253, 256), (256, 128), (128, 1),                # critic
    ]
    keys = jax.random.split(key, len(dims))
    params = []
    for k, (fi, fo) in zip(keys, dims):
        wmat, b = init_linear(k, fi, fo)
        params.extend([wmat, b])
    return params  # flat list of 26 arrays: [w, b, w, b, ...], w is (in, out)


def pack_params(params):
    """Dense-pack all weights into one bf16 slab and all biases into one f32 slab."""
    (hw1, hb1, hw2, hb2, hw3, hb3,
     pw1, pb1, pw2, pb2, pw3, pb3,
     aw1, ab1, aw2, ab2, aw3, ab3, aw4, ab4,
     cw1, cb1, cw2, cb2, cw3, cb3) = params

    wslab = jnp.zeros((W_SLAB_ROWS, W_SLAB_COLS), jnp.float32)

    def put(slab, r0, c0, mat):
        rr, cc = mat.shape
        return slab.at[r0:r0 + rr, c0:c0 + cc].set(mat)

    def put_bd(slab, r0, c0, mat):
        # 256x256 block-diagonal with `mat` at (0,0) and (128,128)
        slab = put(slab, r0, c0, mat)
        return put(slab, r0 + 128, c0 + 128, mat)

    # encoders
    wslab = put_bd(wslab, HBD1_R, HBD1_C, hw1)
    wslab = put_bd(wslab, HBD2_R, HBD2_C, hw2)
    wslab = put_bd(wslab, HBD3_R, HBD3_C, hw3)
    wslab = put(wslab, PW1_R, PW1_C, pw1)
    wslab = put(wslab, PW2_R, PW2_C, pw2)
    wslab = put(wslab, PW3_R, PW3_C, pw3)

    # fused actor/critic layer 1: columns = [actor 256 | critic 256]; rows split by
    # concat segment: feet pairs (2 x (24,24)), privilege (24), proprioception (133).
    w1 = jnp.concatenate([aw1, cw1], axis=1)             # (253, 512)
    wslab = put(wslab, W1P0_R, 0, w1[0:24])              # foot 0
    wslab = put(wslab, W1P0_R + 128, 0, w1[24:48])       # foot 1
    wslab = put(wslab, W1P1_R, 0, w1[48:72])             # foot 2
    wslab = put(wslab, W1P1_R + 128, 0, w1[72:96])       # foot 3
    wslab = put(wslab, W1PRIV_R, 0, w1[96:120])
    wslab = put(wslab, W1PROP_R, 0, w1[120:253])

    # trunk + merged head
    wslab = put(wslab, AW2_R, AW2_C, aw2)
    wslab = put(wslab, AW3_R, AW3_C, aw3)
    wslab = put(wslab, CW2_R, CW2_C, cw2)
    wslab = put(wslab, HEAD_R, HEAD_C, aw4)                      # rows 0:128, cols 0:16
    wslab = put(wslab, HEAD_R + 128, HEAD_C + ACTOR_OUT, cw3)    # rows 128:256, col 16

    bslab = jnp.zeros((B_SLAB_ROWS, W_SLAB_COLS), jnp.float32)

    def putb(slab, row, c0, vec):
        v = jnp.asarray(vec).reshape(-1)
        return slab.at[row, c0:c0 + v.shape[0]].set(v)

    # height-encoder biases duplicated for the two 128-lane blocks of a pair
    bslab = putb(bslab, B_H1, 0, hb1); bslab = putb(bslab, B_H1, 128, hb1)
    bslab = putb(bslab, B_H2, 0, hb2); bslab = putb(bslab, B_H2, 128, hb2)
    bslab = putb(bslab, B_H3, 0, hb3); bslab = putb(bslab, B_H3, 128, hb3)
    bslab = putb(bslab, B_P1, 0, pb1)
    bslab = putb(bslab, B_P2, 0, pb2)
    bslab = putb(bslab, B_P3, 0, pb3)
    bslab = putb(bslab, B_L1, 0, jnp.concatenate([ab1, cb1], axis=1))
    bslab = putb(bslab, B_A2, 0, ab2)
    bslab = putb(bslab, B_A3, 0, ab3)
    bslab = putb(bslab, B_C2, 0, cb2)
    bslab = putb(bslab, B_OUT, 0, ab4)
    bslab = putb(bslab, B_OUT, ACTOR_OUT, cb3)

    return wslab.astype(jnp.bfloat16), bslab


# ----------------------------------------------------------------------------
# Forward wrapper
# ----------------------------------------------------------------------------
def _tile_m(n):
    if n >= 256:
        return 256                      # fits every generation's VMEM budget (incl. v7x 64 MiB)
    return _round_up(max(n, 1), 8)


@jax.jit
def teacher_forward(obs, w_slab, b_slab):
    n = obs.shape[0]
    tm = _tile_m(n)
    n_pad = _round_up(n, tm)
    num_tiles = n_pad // tm

    proprio = obs[:, :PROPRIO]                                       # (n, 133)
    heights = obs[:, PROPRIO:PROPRIO + N_FEET * HEIGHT_PER_FOOT]     # (n, 208)
    priv = obs[:, PROPRIO + N_FEET * HEIGHT_PER_FOOT:]               # (n, 50)

    # heights -> (2, n_pad, 256): pair p holds foot 2p in lanes 0:52 and
    # foot 2p+1 in lanes 128:180 (zero-padded), matching the block-diagonal weights.
    hp = heights.reshape(n, 2, 2, HEIGHT_PER_FOOT)
    hp = jnp.pad(hp, ((0, n_pad - n), (0, 0), (0, 0), (0, 128 - HEIGHT_PER_FOOT)))
    hp = hp.reshape(n_pad, 2, 256).transpose(1, 0, 2).astype(jnp.bfloat16)

    priv_p = jnp.pad(priv, ((0, n_pad - n), (0, 128 - PRIV))).astype(jnp.bfloat16)
    prop_p = jnp.pad(proprio, ((0, n_pad - n), (0, 256 - PROPRIO))).astype(jnp.bfloat16)
    # TODO(synk): if the env emits obs with 128-aligned segments / leading foot axis,
    # these pad/transpose passes disappear entirely.

    flops = 2 * _PADDED_MACS_PER_ROW * n_pad
    bytes_accessed = (w_slab.size * 2 + b_slab.size * 4
                      + hp.size * 2 + priv_p.size * 2 + prop_p.size * 2
                      + n_pad * 128 * 4)

    out = pl.pallas_call(
        functools.partial(teacher_kernel, tile_m=tm),
        out_shape=jax.ShapeDtypeStruct((n_pad, 128), jnp.float32),
        grid=(num_tiles,),
        in_specs=[
            pl.BlockSpec((2, tm, 256), lambda i: (0, i, 0)),               # heights (pairs)
            pl.BlockSpec((tm, 128), lambda i: (i, 0)),                     # privilege
            pl.BlockSpec((tm, 256), lambda i: (i, 0)),                     # proprioception
            pl.BlockSpec((W_SLAB_ROWS, W_SLAB_COLS), lambda i: (0, 0)),    # weights (resident)
            pl.BlockSpec((B_SLAB_ROWS, W_SLAB_COLS), lambda i: (0, 0)),    # biases  (resident)
        ],
        out_specs=pl.BlockSpec((tm, 128), lambda i: (i, 0)),
        compiler_params=pltpu.CompilerParams(
            dimension_semantics=("parallel",),
            vmem_limit_bytes=32 * 1024 * 1024,
        ),
        cost_estimate=pl.CostEstimate(flops=flops, transcendentals=0,
                                      bytes_accessed=bytes_accessed),
    )(hp, priv_p, prop_p, w_slab, b_slab)

    actor = out[:n, :ACTOR_OUT]
    critic = out[:n, ACTOR_OUT:ACTOR_OUT + CRITIC_OUT]
    return actor, critic


# ----------------------------------------------------------------------------
# Pure-JAX reference (HIGHEST precision f32) for correctness checking
# ----------------------------------------------------------------------------
def _leaky(x):
    return jnp.where(x > 0, x, NEG_SLOPE * x)


def teacher_ref(obs, params):
    (hw1, hb1, hw2, hb2, hw3, hb3,
     pw1, pb1, pw2, pb2, pw3, pb3,
     aw1, ab1, aw2, ab2, aw3, ab3, aw4, ab4,
     cw1, cb1, cw2, cb2, cw3, cb3) = params

    hi = jax.lax.Precision.HIGHEST

    def lin(x, wmat, b):
        return jnp.dot(x, wmat, precision=hi) + b

    def enc3(x, w1, b1, w2, b2, w3, b3):
        h = _leaky(lin(x, w1, b1))
        h = _leaky(lin(h, w2, b2))
        return lin(h, w3, b3)

    proprio = obs[:, :PROPRIO]
    heights = obs[:, PROPRIO:PROPRIO + N_FEET * HEIGHT_PER_FOOT].reshape(
        -1, N_FEET, HEIGHT_PER_FOOT)
    priv = obs[:, PROPRIO + N_FEET * HEIGHT_PER_FOOT:]

    h = enc3(heights, hw1, hb1, hw2, hb2, hw3, hb3).reshape(obs.shape[0], -1)
    p = enc3(priv, pw1, pb1, pw2, pb2, pw3, pb3)
    enc = jnp.concatenate([h, p, proprio], axis=1)

    a = _leaky(lin(enc, aw1, ab1))
    a = _leaky(lin(a, aw2, ab2))
    a = _leaky(lin(a, aw3, ab3))
    actor = lin(a, aw4, ab4)

    c = _leaky(lin(enc, cw1, cb1))
    c = _leaky(lin(c, cw2, cb2))
    critic = lin(c, cw3, cb3)
    return actor, critic


if __name__ == "__main__":
    key = jax.random.PRNGKey(0)
    num_envs = 8
    obs = jax.random.normal(key, (num_envs, OBS_DIM), dtype=jnp.float32)
    params = init_params(seed=0)
    w_slab, b_slab = pack_params(params)   # packed once, reused every forward

    actor, critic = teacher_forward(obs, w_slab, b_slab)
    jax.block_until_ready((actor, critic))

    assert actor.shape == (num_envs, ACTOR_OUT), actor.shape
    assert critic.shape == (num_envs, CRITIC_OUT), critic.shape
    assert bool(jnp.all(jnp.isfinite(actor))) and bool(jnp.all(jnp.isfinite(critic)))

    ref_actor, ref_critic = teacher_ref(obs, params)
    # bf16 weights/activations with f32 MXU accumulation vs. f32 HIGHEST reference.
    assert jnp.allclose(actor, ref_actor, rtol=5e-2, atol=5e-2)
    assert jnp.allclose(critic, ref_critic, rtol=5e-2, atol=5e-2)

    print("KERNEL_OK")
</pallas_src>

<mosaic_0001>
module attributes {stable_mosaic.version = 11 : i64} {
  func.func @teacher_kernel(%arg0: i32, %arg1: memref<2x8x256xbf16, #tpu.memory_space<vmem>>, %arg2: memref<8x128xbf16, #tpu.memory_space<vmem>>, %arg3: memref<8x256xbf16, #tpu.memory_space<vmem>>, %arg4: memref<1792x512xbf16, #tpu.memory_space<vmem>>, %arg5: memref<16x512xf32, #tpu.memory_space<vmem>>, %arg6: memref<8x128xf32, #tpu.memory_space<vmem>>) attributes {dimension_semantics = [#tpu.dimension_semantics<parallel>], iteration_bounds = array<i64: 1>, scalar_prefetch = 0 : i64, scratch_operands = 0 : i64, tpu.core_type = #tpu.core_type<tc>, window_params = [{transform_indices = @transform_0, window_bounds = array<i64: 2, 8, 256>}, {transform_indices = @transform_1, window_bounds = array<i64: 8, 128>}, {transform_indices = @transform_2, window_bounds = array<i64: 8, 256>}, {pipeline_mode = #tpu.pipeline_mode<synchronous>, transform_indices = @transform_3, window_bounds = array<i64: 1792, 512>}, {pipeline_mode = #tpu.pipeline_mode<synchronous>, transform_indices = @transform_4, window_bounds = array<i64: 16, 512>}, {transform_indices = @transform_5, window_bounds = array<i64: 8, 128>}]} {
    %c0 = arith.constant 0 : index
    %c0_0 = arith.constant 0 : index
    %c0_1 = arith.constant 0 : index
    %0 = vector.load %arg1[%c0, %c0_0, %c0_1] : memref<2x8x256xbf16, #tpu.memory_space<vmem>>, vector<2x8x256xbf16>
    %1 = vector.shape_cast %0 : vector<2x8x256xbf16> to vector<16x256xbf16>
    %c0_2 = arith.constant 0 : index
    %c0_3 = arith.constant 0 : index
    %2 = vector.load %arg4[%c0_2, %c0_3] : memref<1792x512xbf16, #tpu.memory_space<vmem>>, vector<256x256xbf16>
    %cst = arith.constant dense<0.000000e+00> : vector<16x256xf32>
    %3 = tpu.matmul %1, %2, %cst {dimension_numbers = #tpu.dot_dimension_numbers<[1], [0], [0], [1], [0, 0, 1, 1], [], []>} : vector<16x256xbf16>, vector<256x256xbf16>, vector<16x256xf32> -> vector<16x256xf32>
    %c0_4 = arith.constant 0 : index
    %c0_5 = arith.constant 0 : index
    %4 = vector.load %arg5[%c0_4, %c0_5] : memref<16x512xf32, #tpu.memory_space<vmem>>, vector<1x256xf32>
    %5 = vector.broadcast %4 : vector<1x256xf32> to vector<16x256xf32>
    %6 = arith.addf %3, %5 : vector<16x256xf32>
    %cst_6 = arith.constant 0.000000e+00 : f32
    %7 = vector.broadcast %cst_6 : f32 to vector<16x256xf32>
    %8 = arith.cmpf ogt, %6, %7 : vector<16x256xf32>
    %cst_7 = arith.constant 0.00999999977 : f32
    %9 = vector.broadcast %cst_7 : f32 to vector<16x256xf32>
    %10 = arith.mulf %9, %6 : vector<16x256xf32>
    %11 = arith.select %8, %6, %10 : vector<16x256xi1>, vector<16x256xf32>
    %12 = arith.truncf %11 : vector<16x256xf32> to vector<16x256xbf16>
    %c0_8 = arith.constant 0 : index
    %c256 = arith.constant 256 : index
    %13 = vector.load %arg4[%c0_8, %c256] : memref<1792x512xbf16, #tpu.memory_space<vmem>>, vector<256x256xbf16>
    %cst_9 = arith.constant dense<0.000000e+00> : vector<16x256xf32>
    %14 = tpu.matmul %12, %13, %cst_9 {dimension_numbers = #tpu.dot_dimension_numbers<[1], [0], [0], [1], [0, 0, 1, 1], [], []>} : vector<16x256xbf16>, vector<256x256xbf16>, vector<16x256xf32> -> vector<16x256xf32>
    %c1 = arith.constant 1 : index
    %c0_10 = arith.constant 0 : index
    %15 = vector.load %arg5[%c1, %c0_10] : memref<16x512xf32, #tpu.memory_space<vmem>>, vector<1x256xf32>
    %16 = vector.broadcast %15 : vector<1x256xf32> to vector<16x256xf32>
    %17 = arith.addf %14, %16 : vector<16x256xf32>
    %cst_11 = arith.constant 0.000000e+00 : f32
    %18 = vector.broadcast %cst_11 : f32 to vector<16x256xf32>
    %19 = arith.cmpf ogt, %17, %18 : vector<16x256xf32>
    %cst_12 = arith.constant 0.00999999977 : f32
    %20 = vector.broadcast %cst_12 : f32 to vector<16x256xf32>
    %21 = arith.mulf %20, %17 : vector<16x256xf32>
    %22 = arith.select %19, %17, %21 : vector<16x256xi1>, vector<16x256xf32>
    %23 = arith.truncf %22 : vector<16x256xf32> to vector<16x256xbf16>
    %c256_13 = arith.constant 256 : index
    %c0_14 = arith.constant 0 : index
    %24 = vector.load %arg4[%c256_13, %c0_14] : memref<1792x512xbf16, #tpu.memory_space<vmem>>, vector<256x256xbf16>
    %cst_15 = arith.constant dense<0.000000e+00> : vector<16x256xf32>
    %25 = tpu.matmul %23, %24, %cst_15 {dimension_numbers = #tpu.dot_dimension_numbers<[1], [0], [0], [1], [0, 0, 1, 1], [], []>} : vector<16x256xbf16>, vector<256x256xbf16>, vector<16x256xf32> -> vector<16x256xf32>
    %c2 = arith.constant 2 : index
    %c0_16 = arith.constant 0 : index
    %26 = vector.load %arg5[%c2, %c0_16] : memref<16x512xf32, #tpu.memory_space<vmem>>, vector<1x256xf32>
    %27 = vector.broadcast %26 : vector<1x256xf32> to vector<16x256xf32>
    %28 = arith.addf %25, %27 : vector<16x256xf32>
    %29 = arith.truncf %28 : vector<16x256xf32> to vector<16x256xbf16>
    %30 = vector.shape_cast %29 : vector<16x256xbf16> to vector<2x8x256xbf16>
    %c0_17 = arith.constant 0 : index
    %c0_18 = arith.constant 0 : index
    %31 = vector.load %arg2[%c0_17, %c0_18] : memref<8x128xbf16, #tpu.memory_space<vmem>>, vector<8x128xbf16>
    %c1280 = arith.constant 1280 : index
    %c384 = arith.constant 384 : index
    %32 = vector.load %arg4[%c1280, %c384] : memref<1792x512xbf16, #tpu.memory_space<vmem>>, vector<128x128xbf16>
    %cst_19 = arith.constant dense<0.000000e+00> : vector<8x128xf32>
    %33 = tpu.matmul %31, %32, %cst_19 {dimension_numbers = #tpu.dot_dimension_numbers<[1], [0], [0], [1], [0, 0, 1, 1], [], []>} : vector<8x128xbf16>, vector<128x128xbf16>, vector<8x128xf32> -> vector<8x128xf32>
    %c3 = arith.constant 3 : index
    %c0_20 = arith.constant 0 : index
    %34 = vector.load %arg5[%c3, %c0_20] : memref<16x512xf32, #tpu.memory_space<vmem>>, vector<1x128xf32>
    %35 = vector.broadcast %34 : vector<1x128xf32> to vector<8x128xf32>
    %36 = arith.addf %33, %35 : vector<8x128xf32>
    %cst_21 = arith.constant 0.000000e+00 : f32
    %37 = vector.broadcast %cst_21 : f32 to vector<8x128xf32>
    %38 = arith.cmpf ogt, %36, %37 : vector<8x128xf32>
    %cst_22 = arith.constant 0.00999999977 : f32
    %39 = vector.broadcast %cst_22 : f32 to vector<8x128xf32>
    %40 = arith.mulf %39, %36 : vector<8x128xf32>
    %41 = arith.select %38, %36, %40 : vector<8x128xi1>, vector<8x128xf32>
    %42 = arith.truncf %41 : vector<8x128xf32> to vector<8x128xbf16>
    %c1408 = arith.constant 1408 : index
    %c384_23 = arith.constant 384 : index
    %43 = vector.load %arg4[%c1408, %c384_23] : memref<1792x512xbf16, #tpu.memory_space<vmem>>, vector<128x128xbf16>
    %cst_24 = arith.constant dense<0.000000e+00> : vector<8x128xf32>
    %44 = tpu.matmul %42, %43, %cst_24 {dimension_numbers = #tpu.dot_dimension_numbers<[1], [0], [0], [1], [0, 0, 1, 1], [], []>} : vector<8x128xbf16>, vector<128x128xbf16>, vector<8x128xf32> -> vector<8x128xf32>
    %c4 = arith.constant 4 : index
    %c0_25 = arith.constant 0 : index
    %45 = vector.load %arg5[%c4, %c0_25] : memref<16x512xf32, #tpu.memory_space<vmem>>, vector<1x128xf32>
    %46 = vector.broadcast %45 : vector<1x128xf32> to vector<8x128xf32>
    %47 = arith.addf %44, %46 : vector<8x128xf32>
    %cst_26 = arith.constant 0.000000e+00 : f32
    %48 = vector.broadcast %cst_26 : f32 to vector<8x128xf32>
    %49 = arith.cmpf ogt, %47, %48 : vector<8x128xf32>
    %cst_27 = arith.constant 0.00999999977 : f32
    %50 = vector.broadcast %cst_27 : f32 to vector<8x128xf32>
    %51 = arith.mulf %50, %47 : vector<8x128xf32>
    %52 = arith.select %49, %47, %51 : vector<8x128xi1>, vector<8x128xf32>
    %53 = arith.truncf %52 : vector<8x128xf32> to vector<8x128xbf16>
    %c1664 = arith.constant 1664 : index
    %c0_28 = arith.constant 0 : index
    %54 = vector.load %arg4[%c1664, %c0_28] : memref<1792x512xbf16, #tpu.memory_space<vmem>>, vector<128x128xbf16>
    %cst_29 = arith.constant dense<0.000000e+00> : vector<8x128xf32>
    %55 = tpu.matmul %53, %54, %cst_29 {dimension_numbers = #tpu.dot_dimension_numbers<[1], [0], [0], [1], [0, 0, 1, 1], [], []>} : vector<8x128xbf16>, vector<128x128xbf16>, vector<8x128xf32> -> vector<8x128xf32>
    %c5 = arith.constant 5 : index
    %c0_30 = arith.constant 0 : index
    %56 = vector.load %arg5[%c5, %c0_30] : memref<16x512xf32, #tpu.memory_space<vmem>>, vector<1x128xf32>
    %57 = vector.broadcast %56 : vector<1x128xf32> to vector<8x128xf32>
    %58 = arith.addf %55, %57 : vector<8x128xf32>
    %59 = arith.truncf %58 : vector<8x128xf32> to vector<8x128xbf16>
    %c0_31 = arith.constant 0 : index
    %c0_32 = arith.constant 0 : index
    %60 = vector.load %arg3[%c0_31, %c0_32] : memref<8x256xbf16, #tpu.memory_space<vmem>>, vector<8x256xbf16>
    %c1024 = arith.constant 1024 : index
    %c0_33 = arith.constant 0 : index
    %61 = vector.load %arg4[%c1024, %c0_33] : memref<1792x512xbf16, #tpu.memory_space<vmem>>, vector<256x512xbf16>
    %cst_34 = arith.constant dense<0.000000e+00> : vector<8x512xf32>
    %62 = tpu.matmul %60, %61, %cst_34 {dimension_numbers = #tpu.dot_dimension_numbers<[1], [0], [0], [1], [0, 0, 1, 1], [], []>} : vector<8x256xbf16>, vector<256x512xbf16>, vector<8x512xf32> -> vector<8x512xf32>
    %c1536 = arith.constant 1536 : index
    %c0_35 = arith.constant 0 : index
    %63 = vector.load %arg4[%c1536, %c0_35] : memref<1792x512xbf16, #tpu.memory_space<vmem>>, vector<128x512xbf16>
    %cst_36 = arith.constant dense<0.000000e+00> : vector<8x512xf32>
    %64 = tpu.matmul %59, %63, %cst_36 {dimension_numbers = #tpu.dot_dimension_numbers<[1], [0], [0], [1], [0, 0, 1, 1], [], []>} : vector<8x128xbf16>, vector<128x512xbf16>, vector<8x512xf32> -> vector<8x512xf32>
    %65 = arith.addf %62, %64 : vector<8x512xf32>
    %66 = vector.extract_strided_slice %30 {offsets = [0, 0, 0], sizes = [1, 8, 256], strides = [1, 1, 1]} : vector<2x8x256xbf16> to vector<1x8x256xbf16>
    %67 = vector.shape_cast %66 : vector<1x8x256xbf16> to vector<8x256xbf16>
    %c512 = arith.constant 512 : index
    %c0_37 = arith.constant 0 : index
    %68 = vector.load %arg4[%c512, %c0_37] : memref<1792x512xbf16, #tpu.memory_space<vmem>>, vector<256x512xbf16>
    %cst_38 = arith.constant dense<0.000000e+00> : vector<8x512xf32>
    %69 = tpu.matmul %67, %68, %cst_38 {dimension_numbers = #tpu.dot_dimension_numbers<[1], [0], [0], [1], [0, 0, 1, 1], [], []>} : vector<8x256xbf16>, vector<256x512xbf16>, vector<8x512xf32> -> vector<8x512xf32>
    %70 = arith.addf %65, %69 : vector<8x512xf32>
    %71 = vector.extract_strided_slice %30 {offsets = [1, 0, 0], sizes = [1, 8, 256], strides = [1, 1, 1]} : vector<2x8x256xbf16> to vector<1x8x256xbf16>
    %72 = vector.shape_cast %71 : vector<1x8x256xbf16> to vector<8x256xbf16>
    %c768 = arith.constant 768 : index
    %c0_39 = arith.constant 0 : index
    %73 = vector.load %arg4[%c768, %c0_39] : memref<1792x512xbf16, #tpu.memory_space<vmem>>, vector<256x512xbf16>
    %cst_40 = arith.constant dense<0.000000e+00> : vector<8x512xf32>
    %74 = tpu.matmul %72, %73, %cst_40 {dimension_numbers = #tpu.dot_dimension_numbers<[1], [0], [0], [1], [0, 0, 1, 1], [], []>} : vector<8x256xbf16>, vector<256x512xbf16>, vector<8x512xf32> -> vector<8x512xf32>
    %75 = arith.addf %70, %74 : vector<8x512xf32>
    %c6 = arith.constant 6 : index
    %c0_41 = arith.constant 0 : index
    %76 = vector.load %arg5[%c6, %c0_41] : memref<16x512xf32, #tpu.memory_space<vmem>>, vector<1x512xf32>
    %77 = vector.broadcast %76 : vector<1x512xf32> to vector<8x512xf32>
    %78 = arith.addf %75, %77 : vector<8x512xf32>
    %cst_42 = arith.constant 0.000000e+00 : f32
    %79 = vector.broadcast %cst_42 : f32 to vector<8x512xf32>
    %80 = arith.cmpf ogt, %78, %79 : vector<8x512xf32>
    %cst_43 = arith.constant 0.00999999977 : f32
    %81 = vector.broadcast %cst_43 : f32 to vector<8x512xf32>
    %82 = arith.mulf %81, %78 : vector<8x512xf32>
    %83 = arith.select %80, %78, %82 : vector<8x512xi1>, vector<8x512xf32>
    %84 = arith.truncf %83 : vector<8x512xf32> to vector<8x512xbf16>
    %85 = vector.extract_strided_slice %84 {offsets = [0, 0], sizes = [8, 256], strides = [1, 1]} : vector<8x512xbf16> to vector<8x256xbf16>
    %86 = vector.extract_strided_slice %84 {offsets = [0, 256], sizes = [8, 256], strides = [1, 1]} : vector<8x512xbf16> to vector<8x256xbf16>
    %c256_44 = arith.constant 256 : index
    %c256_45 = arith.constant 256 : index
    %87 = vector.load %arg4[%c256_44, %c256_45] : memref<1792x512xbf16, #tpu.memory_space<vmem>>, vector<256x256xbf16>
    %cst_46 = arith.constant dense<0.000000e+00> : vector<8x256xf32>
    %88 = tpu.matmul %85, %87, %cst_46 {dimension_numbers = #tpu.dot_dimension_numbers<[1], [0], [0], [1], [0, 0, 1, 1], [], []>} : vector<8x256xbf16>, vector<256x256xbf16>, vector<8x256xf32> -> vector<8x256xf32>
    %c7 = arith.constant 7 : index
    %c0_47 = arith.constant 0 : index
    %89 = vector.load %arg5[%c7, %c0_47] : memref<16x512xf32, #tpu.memory_space<vmem>>, vector<1x256xf32>
    %90 = vector.broadcast %89 : vector<1x256xf32> to vector<8x256xf32>
    %91 = arith.addf %88, %90 : vector<8x256xf32>
    %cst_48 = arith.constant 0.000000e+00 : f32
    %92 = vector.broadcast %cst_48 : f32 to vector<8x256xf32>
    %93 = arith.cmpf ogt, %91, %92 : vector<8x256xf32>
    %cst_49 = arith.constant 0.00999999977 : f32
    %94 = vector.broadcast %cst_49 : f32 to vector<8x256xf32>
    %95 = arith.mulf %94, %91 : vector<8x256xf32>
    %96 = arith.select %93, %91, %95 : vector<8x256xi1>, vector<8x256xf32>
    %97 = arith.truncf %96 : vector<8x256xf32> to vector<8x256xbf16>
    %c1280_50 = arith.constant 1280 : index
    %c0_51 = arith.constant 0 : index
    %98 = vector.load %arg4[%c1280_50, %c0_51] : memref<1792x512xbf16, #tpu.memory_space<vmem>>, vector<256x128xbf16>
    %cst_52 = arith.constant dense<0.000000e+00> : vector<8x128xf32>
    %99 = tpu.matmul %97, %98, %cst_52 {dimension_numbers = #tpu.dot_dimension_numbers<[1], [0], [0], [1], [0, 0, 1, 1], [], []>} : vector<8x256xbf16>, vector<256x128xbf16>, vector<8x128xf32> -> vector<8x128xf32>
    %c8 = arith.constant 8 : index
    %c0_53 = arith.constant 0 : index
    %100 = vector.load %arg5[%c8, %c0_53] : memref<16x512xf32, #tpu.memory_space<vmem>>, vector<1x128xf32>
    %101 = vector.broadcast %100 : vector<1x128xf32> to vector<8x128xf32>
    %102 = arith.addf %99, %101 : vector<8x128xf32>
    %cst_54 = arith.constant 0.000000e+00 : f32
    %103 = vector.broadcast %cst_54 : f32 to vector<8x128xf32>
    %104 = arith.cmpf ogt, %102, %103 : vector<8x128xf32>
    %cst_55 = arith.constant 0.00999999977 : f32
    %105 = vector.broadcast %cst_55 : f32 to vector<8x128xf32>
    %106 = arith.mulf %105, %102 : vector<8x128xf32>
    %107 = arith.select %104, %102, %106 : vector<8x128xi1>, vector<8x128xf32>
    %108 = arith.truncf %107 : vector<8x128xf32> to vector<8x128xbf16>
    %c1280_56 = arith.constant 1280 : index
    %c128 = arith.constant 128 : index
    %109 = vector.load %arg4[%c1280_56, %c128] : memref<1792x512xbf16, #tpu.memory_space<vmem>>, vector<256x128xbf16>
    %cst_57 = arith.constant dense<0.000000e+00> : vector<8x128xf32>
    %110 = tpu.matmul %86, %109, %cst_57 {dimension_numbers = #tpu.dot_dimension_numbers<[1], [0], [0], [1], [0, 0, 1, 1], [], []>} : vector<8x256xbf16>, vector<256x128xbf16>, vector<8x128xf32> -> vector<8x128xf32>
    %c9 = arith.constant 9 : index
    %c0_58 = arith.constant 0 : index
    %111 = vector.load %arg5[%c9, %c0_58] : memref<16x512xf32, #tpu.memory_space<vmem>>, vector<1x128xf32>
    %112 = vector.broadcast %111 : vector<1x128xf32> to vector<8x128xf32>
    %113 = arith.addf %110, %112 : vector<8x128xf32>
    %cst_59 = arith.constant 0.000000e+00 : f32
    %114 = vector.broadcast %cst_59 : f32 to vector<8x128xf32>
    %115 = arith.cmpf ogt, %113, %114 : vector<8x128xf32>
    %cst_60 = arith.constant 0.00999999977 : f32
    %116 = vector.broadcast %cst_60 : f32 to vector<8x128xf32>
    %117 = arith.mulf %116, %113 : vector<8x128xf32>
    %118 = arith.select %115, %113, %117 : vector<8x128xi1>, vector<8x128xf32>
    %119 = arith.truncf %118 : vector<8x128xf32> to vector<8x128xbf16>
    %120 = tpu.concatenate %108, %119 in 1 : vector<8x128xbf16>, vector<8x128xbf16> -> vector<8x256xbf16>
    %c1280_61 = arith.constant 1280 : index
    %c256_62 = arith.constant 256 : index
    %121 = vector.load %arg4[%c1280_61, %c256_62] : memref<1792x512xbf16, #tpu.memory_space<vmem>>, vector<256x128xbf16>
    %cst_63 = arith.constant dense<0.000000e+00> : vector<8x128xf32>
    %122 = tpu.matmul %120, %121, %cst_63 {dimension_numbers = #tpu.dot_dimension_numbers<[1], [0], [0], [1], [0, 0, 1, 1], [], []>} : vector<8x256xbf16>, vector<256x128xbf16>, vector<8x128xf32> -> vector<8x128xf32>
    %c10 = arith.constant 10 : index
    %c0_64 = arith.constant 0 : index
    %123 = vector.load %arg5[%c10, %c0_64] : memref<16x512xf32, #tpu.memory_space<vmem>>, vector<1x128xf32>
    %124 = vector.broadcast %123 : vector<1x128xf32> to vector<8x128xf32>
    %125 = arith.addf %122, %124 : vector<8x128xf32>
    %c0_65 = arith.constant 0 : index
    %c0_66 = arith.constant 0 : index
    %126 = vector.load %arg6[%c0_65, %c0_66] : memref<8x128xf32, #tpu.memory_space<vmem>>, vector<8x128xf32>
    tpu.vector_store %arg6[%c0_65, %c0_66], %125 {strides = array<i32>} : memref<8x128xf32, #tpu.memory_space<vmem>>, vector<8x128xf32>,
    return
  }
  func.func @transform_0(%arg0: i32) -> (i32, i32, i32) {
    %c0_i32 = arith.constant 0 : i32
    %c0_i32_0 = arith.constant 0 : i32
    %c0_i32_1 = arith.constant 0 : i32
    return %c0_i32, %arg0, %c0_i32_0 : i32, i32, i32
  }
  func.func @transform_1(%arg0: i32) -> (i32, i32) {
    %c0_i32 = arith.constant 0 : i32
    %c0_i32_0 = arith.constant 0 : i32
    return %arg0, %c0_i32 : i32, i32
  }
  func.func @transform_2(%arg0: i32) -> (i32, i32) {
    %c0_i32 = arith.constant 0 : i32
    %c0_i32_0 = arith.constant 0 : i32
    return %arg0, %c0_i32 : i32, i32
  }
  func.func @transform_3(%arg0: i32) -> (i32, i32) {
    %c0_i32 = arith.constant 0 : i32
    %c0_i32_0 = arith.constant 0 : i32
    %c0_i32_1 = arith.constant 0 : i32
    return %c0_i32, %c0_i32_0 : i32, i32
  }
  func.func @transform_4(%arg0: i32) -> (i32, i32) {
    %c0_i32 = arith.constant 0 : i32
    %c0_i32_0 = arith.constant 0 : i32
    %c0_i32_1 = arith.constant 0 : i32
    return %c0_i32, %c0_i32_0 : i32, i32
  }
  func.func @transform_5(%arg0: i32) -> (i32, i32) {
    %c0_i32 = arith.constant 0 : i32
    %c0_i32_0 = arith.constant 0 : i32
    return %arg0, %c0_i32 : i32, i32
  }
}

</mosaic_0001>

<bundles_post_ra>
// kernel: teacher_forward.1
= control target key start
LH: loop header
LB: loop body
LE: loop exit
PB: predicated region body
PF: predicated region fallthrough
CT: control target
= control target key end

     0   :  { %10 = vsyncpa [#allocation3], 0  ;;  %s5104_s0 = inlined_call_operand.vmem [shape: bf16[2,8,256], index: 0, kind: input, shape index: {}]   ;;  %s5105_s1 = inlined_call_operand.vmem [shape: bf16[8,128], index: 1, kind: input, shape index: {}]   ;;  %s5106_s2 = inlined_call_operand.vmem [shape: bf16[8,256], index: 2, kind: input, shape index: {}]   ;;  %s5107_s3 = inlined_call_operand.hbm [shape: bf16[1792,512], index: 3, kind: input, shape index: {}]   ;;  %s5108_s4 = inlined_call_operand.hbm [shape: f32[16,512], index: 4, kind: input, shape index: {}]   ;;  %s5109_s5 = inlined_call_operand.vmem [shape: f32[8,128], index: 5, kind: output, shape index: {}]  }
   0x1   :  { %11 = vsyncpa [#allocation5], 0  ;;  %s4931_s18 = smov [#allocation2]   ;;  %s4883_s22 = scalar_lea.hbm %s5107_s3, 57344 }
   0x2   :  { %s23_s19 = sshll.u32 %s4931_s18, 4  ;;  %p4884_p0 = scmp.ne.s32.totalorder %s5107_s3, %s4883_s22  ;;  %s24_s19 = int_to_ptr.vmem [resolvable:$true] %s23_s19 }
   0x3   :  { %p4887_p1 = scmp.lt.u32.totalorder %s4883_s22, %s5107_s3 }
   0x5   :  { %p4889_p2 = pnand %p4887_p1, %p4884_p0 }
   0x7   :  { %4892 = shalt.err (!%p4889_p2)
}
   0x8   :  { %s4893_s27 = scalar_lea.vmem %s24_s19, 57344  ;;  %p4898_p4 = scmp.lt.s32.totalorder %s24_s19, %s24_s19 }
   0x9   :  { %p4894_p3 = scmp.ne.s32.totalorder %s24_s19, %s4893_s27  ;;  %p4899_p5 = scmp.lt.s32.totalorder %s4893_s27, %s4893_s27 }
   0xb   :  { %p4900_p6 = por %p4899_p5, %p4898_p4 }
   0xd   :  { %p4901_p7 = pnand %p4900_p6, %p4894_p3 }
   0xf   :  { %4904 = shalt.err (!%p4901_p7)
}
  0x10   :  { %s4932_s28 = smov 256   ;;  %s4933_s29 = smov 16  }
  0x11   :  { %29 = dma.hbm_to_vmem [thread:$0]  %s5107_s3, 57344, %s24_s19, [#allocation3], %s4932_s28, %s4932_s28, %s4933_s29  }
  0x12   :  { %s4934_s7 = smov [#allocation4]   ;;  %s4905_s11 = scalar_lea.hbm %s5108_s4, 1024 }
  0x13   :  { %s35_s8 = sshll.u32 %s4934_s7, 4  ;;  %p4906_p8 = scmp.ne.s32.totalorder %s5108_s4, %s4905_s11  ;;  %s36_s8 = int_to_ptr.vmem [resolvable:$true] %s35_s8 }
  0x14   :  { %p4909_p9 = scmp.lt.u32.totalorder %s4905_s11, %s5108_s4 }
  0x16   :  { %p4911_p10 = pnand %p4909_p9, %p4906_p8 }
  0x18   :  { %4914 = shalt.err (!%p4911_p10)
}
  0x19   :  { %s4915_s16 = scalar_lea.vmem %s36_s8, 1024  ;;  %p4920_p12 = scmp.lt.s32.totalorder %s36_s8, %s36_s8 }
  0x1a   :  { %p4916_p11 = scmp.ne.s32.totalorder %s36_s8, %s4915_s16  ;;  %p4921_p13 = scmp.lt.s32.totalorder %s4915_s16, %s4915_s16 }
  0x1c   :  { %p4922_p0 = por %p4921_p13, %p4920_p12 }
  0x1e   :  { %p4923_p1 = pnand %p4922_p0, %p4916_p11 }
  0x20   :  { %4926 = shalt.err (!%p4923_p1)
}
  0x21   :  { %s4935_s3 = smov 512   ;;  %s4936_s17 = smov 32  }
  0x22   :  { %41 = dma.hbm_to_vmem [thread:$0]  %s5108_s4, 1024, %s36_s8, [#allocation5], %s4935_s3, %s4935_s3, %s4936_s17  }
  0x23   :  { %4927 = dma.done.wait [#allocation3], 57344  }
  0x24   :  { %4928 = vsyncadd [#allocation3], 4294909952 }
  0x25   :  { %4929 = dma.done.wait [#allocation5], 1024  }
  0x26   :  { %4930 = vsyncadd [#allocation5], 4294966272  ;;  %v4278_v0 = vld [vmem:[#allocation2 + $0x4] ss:$16 sps:$4 sm:$0xff]   ;;  %v4280_v1 = vld [vmem:[#allocation2] ss:$16 sps:$4 sm:$0xff]  }
  0x27   :  { %265 = vmatprep.subr.bf16.mxu0 %v4278_v0  ;;  %v4281_v2 = vld [vmem:[#allocation2 + $0x24] ss:$16 sps:$4 sm:$0xff]   ;;  %v4283_v3 = vld [vmem:[#allocation2 + $0x20] ss:$16 sps:$4 sm:$0xff]   ;;  %v4329_v16 = vld [vmem:[#allocation2 + $0xc] ss:$16 sps:$4 sm:$0xff]  }
  0x28   :  { %266 = vmatpush1.bf16.msra.mxu0 %v4280_v1  ;;  %v4284_v4 = vld [vmem:[#allocation2 + $0x44] ss:$16 sps:$4 sm:$0xff]   ;;  %v4286_v5 = vld [vmem:[#allocation2 + $0x40] ss:$16 sps:$4 sm:$0xff]   ;;  %v4331_v17 = vld [vmem:[#allocation2 + $0x8] ss:$16 sps:$4 sm:$0xff]   ;;  %527 = vmatprep.subr.bf16.mxu1 %v4329_v16 }
  0x29   :  { %267 = vmatprep.subr.bf16.mxu0 %v4281_v2  ;;  %v4287_v6 = vld [vmem:[#allocation2 + $0x64] ss:$16 sps:$4 sm:$0xff]   ;;  %v4289_v7 = vld [vmem:[#allocation2 + $0x60] ss:$16 sps:$4 sm:$0xff]   ;;  %v4332_v18 = vld [vmem:[#allocation2 + $0x2c] ss:$16 sps:$4 sm:$0xff]   ;;  %528 = vmatpush1.bf16.msra.mxu1 %v4331_v17 }
  0x2a   :  { %v4290_v8 = vld [vmem:[#allocation2 + $0x84] ss:$16 sps:$4 sm:$0xff]   ;;  %v4292_v9 = vld [vmem:[#allocation2 + $0x80] ss:$16 sps:$4 sm:$0xff]   ;;  %v4334_v19 = vld [vmem:[#allocation2 + $0x28] ss:$16 sps:$4 sm:$0xff]   ;;  %529 = vmatprep.subr.bf16.mxu1 %v4332_v18 }
  0x2b   :  { %v4293_v10 = vld [vmem:[#allocation2 + $0xa4] ss:$16 sps:$4 sm:$0xff]   ;;  %v4295_v11 = vld [vmem:[#allocation2 + $0xa0] ss:$16 sps:$4 sm:$0xff]   ;;  %v4335_v21 = vld [vmem:[#allocation2 + $0x4c] ss:$16 sps:$4 sm:$0xff]  }
  0x2c   :  { %268 = vmatpush1.bf16.msra.mxu0 %v4283_v3  ;;  %v4296_v12 = vld [vmem:[#allocation2 + $0xc4] ss:$16 sps:$4 sm:$0xff]   ;;  %v4298_v13 = vld [vmem:[#allocation2 + $0xc0] ss:$16 sps:$4 sm:$0xff]   ;;  %v4337_v23 = vld [vmem:[#allocation2 + $0x48] ss:$16 sps:$4 sm:$0xff]  }
  0x2d   :  { %269 = vmatprep.subr.bf16.mxu0 %v4284_v4  ;;  %v4299_v14 = vld [vmem:[#allocation2 + $0xe4] ss:$16 sps:$4 sm:$0xff]   ;;  %v4301_v20 = vld [vmem:[#allocation2 + $0xe0] ss:$16 sps:$4 sm:$0xff]   ;;  %530 = vmatpush1.bf16.msra.mxu1 %v4334_v19  ;;  %v4338_v25 = vld [vmem:[#allocation2 + $0x6c] ss:$16 sps:$4 sm:$0xff]  }
  0x2e   :  { %v4328_v15 = vld [vmem:[%s5104_s0 + $0x4] ss:$8 sps:$4 sm:$0xff]   ;;  %v4304_v24 = vld [vmem:[#allocation2 + $0x100] ss:$16 sps:$4 sm:$0xff]   ;;  %531 = vmatprep.subr.bf16.mxu1 %v4335_v21  ;;  %v4340_v27 = vld [vmem:[#allocation2 + $0x68] ss:$16 sps:$4 sm:$0xff]  }
  0x2f   :  { %297 = vmatprep.mubr.bf16.mxu0 %v4328_v15  ;;  %v4302_v22 = vld [vmem:[#allocation2 + $0x104] ss:$16 sps:$4 sm:$0xff]   ;;  %v4307_v28 = vld [vmem:[#allocation2 + $0x120] ss:$16 sps:$4 sm:$0xff]   ;;  %v4341_v29 = vld [vmem:[#allocation2 + $0x8c] ss:$16 sps:$4 sm:$0xff]  }
  0x30   :  { %270 = vmatpush1.bf16.msra.mxu0 %v4286_v5  ;;  %v4305_v26 = vld [vmem:[#allocation2 + $0x124] ss:$16 sps:$4 sm:$0xff]   ;;  %v4310_v31 = vld [vmem:[#allocation2 + $0x140] ss:$16 sps:$4 sm:$0xff]   ;;  %v4343_v32 = vld [vmem:[#allocation2 + $0x88] ss:$16 sps:$4 sm:$0xff]  }
  0x31   :  { %271 = vmatprep.subr.bf16.mxu0 %v4287_v6  ;;  %532 = vmatpush1.bf16.msra.mxu1 %v4337_v23  ;;  %v4308_v30 = vld [vmem:[#allocation2 + $0x144] ss:$16 sps:$4 sm:$0xff]   ;;  %v4344_v34 = vld [vmem:[#allocation2 + $0xac] ss:$16 sps:$4 sm:$0xff]   ;;  %v4346_v35 = vld [vmem:[#allocation2 + $0xa8] ss:$16 sps:$4 sm:$0xff]  }
  0x32   :  { %533 = vmatprep.subr.bf16.mxu1 %v4338_v25  ;;  %v4311_v33 = vld [vmem:[#allocation2 + $0x164] ss:$16 sps:$4 sm:$0xff]   ;;  %v4313_v36 = vld [vmem:[#allocation2 + $0x160] ss:$16 sps:$4 sm:$0xff]   ;;  %v4347_v37 = vld [vmem:[#allocation2 + $0xcc] ss:$16 sps:$4 sm:$0xff]  }
  0x33   :  { %v4314_v38 = vld [vmem:[#allocation2 + $0x184] ss:$16 sps:$4 sm:$0xff]   ;;  %v4349_v39 = vld [vmem:[#allocation2 + $0xc8] ss:$16 sps:$4 sm:$0xff]   ;;  %v4316_v40 = vld [vmem:[#allocation2 + $0x180] ss:$16 sps:$4 sm:$0xff]  }
  0x34   :  { %272 = vmatpush1.bf16.msra.mxu0 %v4289_v7  ;;  %v4350_v41 = vld [vmem:[#allocation2 + $0xec] ss:$16 sps:$4 sm:$0xff]   ;;  %v4317_v42 = vld [vmem:[#allocation2 + $0x1a4] ss:$16 sps:$4 sm:$0xff]   ;;  %v4352_v43 = vld [vmem:[#allocation2 + $0xe8] ss:$16 sps:$4 sm:$0xff]  }
  0x35   :  { %273 = vmatprep.subr.bf16.mxu0 %v4290_v8  ;;  %534 = vmatpush1.bf16.msra.mxu1 %v4340_v27  ;;  %v4319_v44 = vld [vmem:[#allocation2 + $0x1a0] ss:$16 sps:$4 sm:$0xff]   ;;  %v4353_v45 = vld [vmem:[#allocation2 + $0x10c] ss:$16 sps:$4 sm:$0xff]   ;;  %v4320_v46 = vld [vmem:[#allocation2 + $0x1c4] ss:$16 sps:$4 sm:$0xff]  }
  0x36   :  { %535 = vmatprep.subr.bf16.mxu1 %v4341_v29  ;;  %v4355_v47 = vld [vmem:[#allocation2 + $0x108] ss:$16 sps:$4 sm:$0xff]   ;;  %v4322_v48 = vld [vmem:[#allocation2 + $0x1c0] ss:$16 sps:$4 sm:$0xff]   ;;  %v4356_v49 = vld [vmem:[#allocation2 + $0x12c] ss:$16 sps:$4 sm:$0xff]   ;;  %v85_v29 = vlaneseq }
  0x37   :  { %v4323_v50 = vld [vmem:[#allocation2 + $0x1e4] ss:$16 sps:$4 sm:$0xff]   ;;  %v4358_v51 = vld [vmem:[#allocation2 + $0x128] ss:$16 sps:$4 sm:$0xff]   ;;  %v4325_v52 = vld [vmem:[#allocation2 + $0x1e0] ss:$16 sps:$4 sm:$0xff]  }
  0x38   :  { %274 = vmatpush1.bf16.msra.mxu0 %v4292_v9  ;;  %v4359_v53 = vld [vmem:[#allocation2 + $0x14c] ss:$16 sps:$4 sm:$0xff]   ;;  %v4326_v54 = vld [vmem:[%s5104_s0] ss:$8 sps:$4 sm:$0xff]   ;;  %v4937_v2 = vmov 0.0   ;;  %vm4938_vm4 = vmmov 0  }
  0x39   :  { %275 = vmatprep.subr.bf16.mxu0 %v4293_v10  ;;  %536 = vmatpush1.bf16.msra.mxu1 %v4343_v32  ;;  %v4361_v55 = vld [vmem:[#allocation2 + $0x148] ss:$16 sps:$4 sm:$0xff]   ;;  %v4362_v56 = vld [vmem:[#allocation2 + $0x16c] ss:$16 sps:$4 sm:$0xff]   ;;  %v4385_v3 = vld [vmem:[#allocation2 + $0x200] ss:$16 sps:$4 sm:$0xff]  }
  0x3a   :  { %537 = vmatprep.subr.bf16.mxu1 %v4344_v34  ;;  %v4364_v57 = vld [vmem:[#allocation2 + $0x168] ss:$16 sps:$4 sm:$0xff]   ;;  %v4365_v58 = vld [vmem:[#allocation2 + $0x18c] ss:$16 sps:$4 sm:$0xff]   ;;  %v4387_v4 = vld [vmem:[#allocation2 + $0x204] ss:$16 sps:$4 sm:$0xff]  }
  0x3b   :  { %v4367_v59 = vld [vmem:[#allocation2 + $0x188] ss:$16 sps:$4 sm:$0xff]   ;;  %v4368_v60 = vld [vmem:[#allocation2 + $0x1ac] ss:$16 sps:$4 sm:$0xff]   ;;  %v4390_v5 = vld [vmem:[#allocation2 + $0x224] ss:$16 sps:$4 sm:$0xff]  }
  0x3c   :  { %276 = vmatpush1.bf16.msra.mxu0 %v4295_v11  ;;  %v4370_v61 = vld [vmem:[#allocation2 + $0x1a8] ss:$16 sps:$4 sm:$0xff]   ;;  %v4371_v62 = vld [vmem:[#allocation2 + $0x1cc] ss:$16 sps:$4 sm:$0xff]   ;;  %v4388_v6 = vld [vmem:[#allocation2 + $0x220] ss:$16 sps:$4 sm:$0xff]  }
  0x3d   :  { %277 = vmatprep.subr.bf16.mxu0 %v4296_v12  ;;  %538 = vmatpush1.bf16.msra.mxu1 %v4346_v35  ;;  %v4373_v63 = vld [vmem:[#allocation2 + $0x1c8] ss:$16 sps:$4 sm:$0xff]   ;;  %v4374_v0 = vld [vmem:[#allocation2 + $0x1ec] ss:$16 sps:$4 sm:$0xff]   ;;  %v4393_v7 = vld [vmem:[#allocation2 + $0x244] ss:$16 sps:$4 sm:$0xff]  }
  0x3e   :  { %539 = vmatprep.subr.bf16.mxu1 %v4347_v37  ;;  %v4376_v1 = vld [vmem:[#allocation2 + $0x1e8] ss:$16 sps:$4 sm:$0xff]   ;;  %v4391_v8 = vld [vmem:[#allocation2 + $0x240] ss:$16 sps:$4 sm:$0xff]   ;;  %v4396_v9 = vld [vmem:[#allocation2 + $0x264] ss:$16 sps:$4 sm:$0xff]  }
  0x3f   :  { %v4394_v10 = vld [vmem:[#allocation2 + $0x260] ss:$16 sps:$4 sm:$0xff]   ;;  %v4399_v11 = vld [vmem:[#allocation2 + $0x284] ss:$16 sps:$4 sm:$0xff]  }
  0x40   :  { %278 = vmatpush1.bf16.msra.mxu0 %v4298_v13  ;;  %v4397_v12 = vld [vmem:[#allocation2 + $0x280] ss:$16 sps:$4 sm:$0xff]   ;;  %v4402_v13 = vld [vmem:[#allocation2 + $0x2a4] ss:$16 sps:$4 sm:$0xff]  }
  0x41   :  { %279 = vmatprep.subr.bf16.mxu0 %v4299_v14  ;;  %540 = vmatpush1.bf16.msra.mxu1 %v4349_v39  ;;  %v4400_v14 = vld [vmem:[#allocation2 + $0x2a0] ss:$16 sps:$4 sm:$0xff]   ;;  %v4405_v15 = vld [vmem:[#allocation2 + $0x2c4] ss:$16 sps:$4 sm:$0xff]  }
  0x42   :  { %541 = vmatprep.subr.bf16.mxu1 %v4350_v41  ;;  %v4403_v16 = vld [vmem:[#allocation2 + $0x2c0] ss:$16 sps:$4 sm:$0xff]   ;;  %v4408_v17 = vld [vmem:[#allocation2 + $0x2e4] ss:$16 sps:$4 sm:$0xff]  }
  0x43   :  { %v4406_v18 = vld [vmem:[#allocation2 + $0x2e0] ss:$16 sps:$4 sm:$0xff]   ;;  %v4411_v19 = vld [vmem:[#allocation2 + $0x304] ss:$16 sps:$4 sm:$0xff]  }
  0x44   :  { %280 = vmatpush1.bf16.msra.mxu0 %v4301_v20  ;;  %v4409_v20 = vld [vmem:[#allocation2 + $0x300] ss:$16 sps:$4 sm:$0xff]   ;;  %v4414_v21 = vld [vmem:[#allocation2 + $0x324] ss:$16 sps:$4 sm:$0xff]  }
  0x45   :  { %281 = vmatprep.subr.bf16.mxu0 %v4302_v22  ;;  %542 = vmatpush1.bf16.msra.mxu1 %v4352_v43  ;;  %v4412_v22 = vld [vmem:[#allocation2 + $0x320] ss:$16 sps:$4 sm:$0xff]   ;;  %v4417_v23 = vld [vmem:[#allocation2 + $0x344] ss:$16 sps:$4 sm:$0xff]  }
  0x46   :  { %543 = vmatprep.subr.bf16.mxu1 %v4353_v45  ;;  %v4420_v25 = vld [vmem:[#allocation2 + $0x364] ss:$16 sps:$4 sm:$0xff]   ;;  %v83_v32 = vld [vmem:[#allocation4] ss:$8 sm:$0x3] }
  0x47   :  { %v4423_v27 = vld [vmem:[#allocation2 + $0x384] ss:$16 sps:$4 sm:$0xff]  }
  0x48   :  { %282 = vmatpush1.bf16.msra.mxu0 %v4304_v24  ;;  %v4415_v24 = vld [vmem:[#allocation2 + $0x340] ss:$16 sps:$4 sm:$0xff]  }
  0x49   :  { %283 = vmatprep.subr.bf16.mxu0 %v4305_v26  ;;  %544 = vmatpush1.bf16.msra.mxu1 %v4355_v47  ;;  %v4418_v26 = vld [vmem:[#allocation2 + $0x360] ss:$16 sps:$4 sm:$0xff]  }
  0x4a   :  { %545 = vmatprep.subr.bf16.mxu1 %v4356_v49 }
  0x4c   :  { %284 = vmatpush1.bf16.msra.mxu0 %v4307_v28  ;;  %v4421_v28 = vld [vmem:[#allocation2 + $0x380] ss:$16 sps:$4 sm:$0xff]  }
  0x4d   :  { %285 = vmatprep.subr.bf16.mxu0 %v4308_v30  ;;  %546 = vmatpush1.bf16.msra.mxu1 %v4358_v51  ;;  %v5001_v30 = vshrl.u32 %v85_v29, 7 }
  0x4e   :  { %547 = vmatprep.subr.bf16.mxu1 %v4359_v53 }
  0x50   :  { %286 = vmatpush1.bf16.msra.mxu0 %v4310_v31  ;;  %v5004_v31 = vsub.s32 0, %v5001_v30 }
  0x51   :  { %287 = vmatprep.subr.bf16.mxu0 %v4311_v33  ;;  %548 = vmatpush1.bf16.msra.mxu1 %v4361_v55  ;;  %v5007_v33 = vsub.s32 1, %v5001_v30  ;;  %v4378_v55 = vld [vmem:[#allocation2 + $0xa2c] ss:$16 sps:$4 sm:$0xff]  }
  0x52   :  { %549 = vmatprep.subr.bf16.mxu1 %v4362_v56  ;;  %v88_v34 = vrot.slane %v83_v32, %v5004_v31  ;;  %v4379_v56 = vld [vmem:[#allocation2 + $0xa4c] ss:$16 sps:$4 sm:$0xff]  }
  0x53   :  { %v92_v35 = vrot.slane %v83_v32, %v5007_v33 }
  0x54   :  { %288 = vmatpush1.bf16.msra.mxu0 %v4313_v36 }
  0x55   :  { %289 = vmatprep.subr.bf16.mxu0 %v4314_v38  ;;  %550 = vmatpush1.bf16.msra.mxu1 %v4364_v57  ;;  %v4380_v57 = vld [vmem:[#allocation2 + $0xa6c] ss:$16 sps:$4 sm:$0xff]  }
  0x56   :  { %551 = vmatprep.subr.bf16.mxu1 %v4365_v58  ;;  %v4381_v58 = vld [vmem:[#allocation2 + $0xa8c] ss:$16 sps:$4 sm:$0xff]  }
  0x58   :  { %290 = vmatpush1.bf16.msra.mxu0 %v4316_v40 }
  0x59   :  { %291 = vmatprep.subr.bf16.mxu0 %v4317_v42  ;;  %552 = vmatpush1.bf16.msra.mxu1 %v4367_v59  ;;  %v4382_v59 = vld [vmem:[#allocation2 + $0xaac] ss:$16 sps:$4 sm:$0xff]  }
  0x5a   :  { %553 = vmatprep.subr.bf16.mxu1 %v4368_v60  ;;  %v4383_v60 = vld [vmem:[#allocation2 + $0xacc] ss:$16 sps:$4 sm:$0xff]  }
  0x5c   :  { %292 = vmatpush1.bf16.msra.mxu0 %v4319_v44 }
  0x5d   :  { %293 = vmatprep.subr.bf16.mxu0 %v4320_v46  ;;  %554 = vmatpush1.bf16.msra.mxu1 %v4370_v61  ;;  %v4384_v61 = vld [vmem:[#allocation2 + $0xaec] ss:$16 sps:$4 sm:$0xff]  }
  0x5e   :  { %555 = vmatprep.subr.bf16.mxu1 %v4371_v62  ;;  %v840_v62 = vld [vmem:[%s5105_s1] sm:$0xf] }
  0x60   :  { %294 = vmatpush1.bf16.msra.mxu0 %v4322_v48 }
  0x61   :  { %295 = vmatprep.subr.bf16.mxu0 %v4323_v50  ;;  %556 = vmatpush1.bf16.msra.mxu1 %v4373_v63  ;;  %v4426_v63 = vld [vmem:[#allocation2 + $0x3a4] ss:$16 sps:$4 sm:$0xff]  }
  0x62   :  { %557 = vmatprep.subr.bf16.mxu1 %v4374_v0  ;;  %v4424_v0 = vld [vmem:[#allocation2 + $0x3a0] ss:$16 sps:$4 sm:$0xff]  }
  0x64   :  { %296 = vmatpush1.bf16.msra.mxu0 %v4325_v52 }
  0x65   :  { %558 = vmatpush1.bf16.msra.mxu1 %v4376_v1  ;;  %789 = vmatprep.subr.bf16.mxu0 %v4387_v4  ;;  %v4429_v1 = vld [vmem:[#allocation2 + $0x3c4] ss:$16 sps:$4 sm:$0xff]  }
  0x66   :  { %4209 = vmatprep.subr.bf16.mxu1 %v4937_v2  ;;  %v4432_v4 = vld [vmem:[#allocation2 + $0x3e4] ss:$16 sps:$4 sm:$0xff]  }
  0x67   :  { %298 = vmatmul.mubr.bf16.vlgmr.msra.gmra.mrb[0].mxu0 %v4326_v54  ;;  %v4377_v54 = vld [vmem:[#allocation2 + $0xa0c] ss:$16 sps:$4 sm:$0xff]  }
  0x68   :  { %790 = vmatpush1.bf16.msra.mxu0 %v4385_v3  ;;  %v4427_v3 = vld [vmem:[#allocation2 + $0x3c0] ss:$16 sps:$4 sm:$0xff]  }
  0x69   :  { %791 = vmatprep.subr.bf16.mxu0 %v4390_v5  ;;  %v4433_v5 = vld [vmem:[#allocation2 + $0xb0c] ss:$16 sps:$4 sm:$0xff]  }
  0x6c   :  { %792 = vmatpush1.bf16.msra.mxu0 %v4388_v6  ;;  %v4430_v6 = vld [vmem:[#allocation2 + $0x3e0] ss:$16 sps:$4 sm:$0xff]  }
  0x6d   :  { %793 = vmatprep.subr.bf16.mxu0 %v4393_v7  ;;  %v4434_v7 = vld [vmem:[#allocation2 + $0xb2c] ss:$16 sps:$4 sm:$0xff]  }
  0x70   :  { %794 = vmatpush1.bf16.msra.mxu0 %v4391_v8  ;;  %v4435_v8 = vld [vmem:[#allocation2 + $0xb4c] ss:$16 sps:$4 sm:$0xff]  }
  0x71   :  { %795 = vmatprep.subr.bf16.mxu0 %v4396_v9  ;;  %v4436_v9 = vld [vmem:[#allocation2 + $0xb6c] ss:$16 sps:$4 sm:$0xff]  }
  0x74   :  { %796 = vmatpush1.bf16.msra.mxu0 %v4394_v10  ;;  %v4437_v10 = vld [vmem:[#allocation2 + $0xb8c] ss:$16 sps:$4 sm:$0xff]  }
  0x75   :  { %797 = vmatprep.subr.bf16.mxu0 %v4399_v11  ;;  %v4438_v11 = vld [vmem:[#allocation2 + $0xbac] ss:$16 sps:$4 sm:$0xff]  }
  0x78   :  { %798 = vmatpush1.bf16.msra.mxu0 %v4397_v12  ;;  %v4439_v12 = vld [vmem:[#allocation2 + $0xbcc] ss:$16 sps:$4 sm:$0xff]  }
  0x79   :  { %799 = vmatprep.subr.bf16.mxu0 %v4402_v13  ;;  %v4440_v13 = vld [vmem:[#allocation2 + $0xbec] ss:$16 sps:$4 sm:$0xff]  }
  0x7c   :  { %800 = vmatpush1.bf16.msra.mxu0 %v4400_v14  ;;  %v355_v14 = vld [vmem:[#allocation4 + $0x1] ss:$8 sm:$0x3] }
  0x7d   :  { %801 = vmatprep.subr.bf16.mxu0 %v4405_v15  ;;  %v360_v15 = vrot.slane %v355_v14, %v5004_v31 }
  0x80   :  { %802 = vmatpush1.bf16.msra.mxu0 %v4403_v16  ;;  %v364_v16 = vrot.slane %v355_v14, %v5007_v33 }
  0x81   :  { %803 = vmatprep.subr.bf16.mxu0 %v4408_v17 }
  0x84   :  { %804 = vmatpush1.bf16.msra.mxu0 %v4406_v18 }
  0x85   :  { %805 = vmatprep.subr.bf16.mxu0 %v4411_v19 }
  0x88   :  { %806 = vmatpush1.bf16.msra.mxu0 %v4409_v20 }
  0x89   :  { %807 = vmatprep.subr.bf16.mxu0 %v4414_v21 }
  0x8c   :  { %808 = vmatpush1.bf16.msra.mxu0 %v4412_v22 }
  0x8d   :  { %809 = vmatprep.subr.bf16.mxu0 %v4417_v23 }
  0x90   :  { %810 = vmatpush1.bf16.msra.mxu0 %v4415_v24 }
  0x91   :  { %811 = vmatprep.subr.bf16.mxu0 %v4420_v25 }
  0x94   :  { %812 = vmatpush1.bf16.msra.mxu0 %v4418_v26 }
  0x95   :  { %813 = vmatprep.subr.bf16.mxu0 %v4423_v27 }
  0x98   :  { %814 = vmatpush1.bf16.msra.mxu0 %v4421_v28 }
  0x99   :  { %815 = vmatprep.subr.bf16.mxu0 %v4426_v63  ;;  %v4467_v63 = vld [vmem:[#allocation2 + $0xc60] ss:$16 sps:$4 sm:$0xff]  }
  0x9c   :  { %816 = vmatpush1.bf16.msra.mxu0 %v4424_v0  ;;  %v4473_v0 = vld [vmem:[#allocation2 + $0xc80] ss:$16 sps:$4 sm:$0xff]  }
  0x9d   :  { %817 = vmatprep.subr.bf16.mxu0 %v4429_v1  ;;  %v4481_v1 = vld [vmem:[#allocation2 + $0xca4] ss:$16 sps:$4 sm:$0xff]  }
  0xa0   :  { %818 = vmatpush1.bf16.msra.mxu0 %v4427_v3  ;;  %v4479_v3 = vld [vmem:[#allocation2 + $0xca0] ss:$16 sps:$4 sm:$0xff]  }
  0xa1   :  { %819 = vmatprep.subr.bf16.mxu0 %v4432_v4  ;;  %v4487_v4 = vld [vmem:[#allocation2 + $0xcc4] ss:$16 sps:$4 sm:$0xff]  }
  0xa4   :  { %820 = vmatpush1.bf16.msra.mxu0 %v4430_v6  ;;  %v617_v6 = vld [vmem:[#allocation4 + $0x2] ss:$8 sm:$0x3] }
  0xa5   :  { %4249 = vmatprep.subr.bf16.mxu0 %v4937_v2 }
 0x13a   :  { %v299_v36 = vpop.f32.mrb[0].mxu0 }
 0x13b   :  { %v300_v37 = vadd.f32 %v299_v36, %v88_v34  ;;  %v301_v38 = vpop.f32.mrb[1].mxu0 }
 0x13c   :  { %v302_v39 = vadd.f32 %v301_v38, %v92_v35  ;;  %v303_v40 = vpop.f32.mrb[2].mxu0  ;;  %v857_v38 = vld [vmem:[#allocation4 + $0x3] ss:$0 sm:$0xff] }
 0x13d   :  { %v312_v41 = vmul.f32 0.01, %v300_v37  ;;  %v304_v42 = vadd.f32 %v303_v40, %v88_v34  ;;  %v305_v43 = vpop.f32.mrb[3].mxu0  ;;  %vm308_vm0 = vcmp.gt.f32.partialorder %v300_v37, 0.0 }
 0x13e   :  { %v313_v44 = vmul.f32 0.01, %v302_v39  ;;  %v306_v45 = vadd.f32 %v305_v43, %v92_v35  ;;  %vm309_vm2 = vcmp.gt.f32.partialorder %v302_v39, 0.0 }
 0x13f   :  { %vm310_vm1 = vcmp.gt.f32.partialorder %v304_v42, 0.0  ;;  %v314_v46 = vmul.f32 0.01, %v304_v42  ;;  %v316_v48 = vsel %vm308_vm0, %v300_v37, %v312_v41 }
 0x140   :  { %v315_v47 = vmul.f32 0.01, %v306_v45  ;;  %vm311_vm3 = vcmp.gt.f32.partialorder %v306_v45, 0.0  ;;  %v317_v50 = vsel %vm309_vm2, %v302_v39, %v313_v44 }
 0x141   :  { %v318_v49 = vsel %vm310_vm1, %v304_v42, %v314_v46 }
 0x142   :  { %v319_v51 = vsel %vm311_vm3, %v306_v45, %v315_v47  ;;  %v320_v52 = vpack.c.bf16 %v318_v49, %v316_v48  ;;  %v4441_v47 = vld [vmem:[#allocation2 + $0xd00] ss:$16 sps:$4 sm:$0xff]  }
 0x143   :  { %v321_v53 = vpack.c.bf16 %v319_v51, %v317_v50  ;;  %v4442_v48 = vld [vmem:[#allocation2 + $0xd20] ss:$16 sps:$4 sm:$0xff]  }
 0x144   :  { %v4443_v49 = vld [vmem:[#allocation2 + $0xd40] ss:$16 sps:$4 sm:$0xff]  }
 0x145   :  { %559 = vmatprep.mubr.bf16.mxu1 %v321_v53  ;;  %v4444_v50 = vld [vmem:[#allocation2 + $0xd60] ss:$16 sps:$4 sm:$0xff]  }
 0x146   :  { %560 = vmatmul.mubr.bf16.vlgmr.msra.gmra.mrb[0].mxu1 %v320_v52  ;;  %v4445_v51 = vld [vmem:[#allocation2 + $0xd80] ss:$16 sps:$4 sm:$0xff]  }
 0x147   :  { %4210 = vmatpush3.bf16.msra.mxu1 %v4377_v54  ;;  %4225 = vmatprep.mubr.msk.bf16.mxu1 %vm4938_vm4, %v4937_v2  ;;  %v4446_v52 = vld [vmem:[#allocation2 + $0xda0] ss:$16 sps:$4 sm:$0xff]  }
 0x148   :  { %4211 = vmatprep.subr.bf16.mxu1 %v4937_v2  ;;  %v4447_v53 = vld [vmem:[#allocation2 + $0xdc0] ss:$16 sps:$4 sm:$0xff]  }
 0x149   :  { %v4448_v54 = vld [vmem:[#allocation2 + $0xde0] ss:$16 sps:$4 sm:$0xff]  }
 0x14b   :  { %4212 = vmatpush3.bf16.msra.mxu1 %v4378_v55  ;;  %v4449_v55 = vld [vmem:[#allocation2 + $0xc00] ss:$16 sps:$4 sm:$0xff]  }
 0x14c   :  { %4213 = vmatprep.subr.bf16.mxu1 %v4937_v2 }
 0x14f   :  { %4214 = vmatpush3.bf16.msra.mxu1 %v4379_v56  ;;  %v4451_v56 = vld [vmem:[#allocation2 + $0xc04] ss:$16 sps:$4 sm:$0xff]  }
 0x150   :  { %4215 = vmatprep.subr.bf16.mxu1 %v4937_v2 }
 0x153   :  { %4216 = vmatpush3.bf16.msra.mxu1 %v4380_v57  ;;  %v4454_v57 = vld [vmem:[#allocation2 + $0xc0c] ss:$16 sps:$4 sm:$0xff]  }
 0x154   :  { %4217 = vmatprep.subr.bf16.mxu1 %v4937_v2 }
 0x157   :  { %4218 = vmatpush3.bf16.msra.mxu1 %v4381_v58  ;;  %v4457_v58 = vld [vmem:[#allocation2 + $0xc24] ss:$16 sps:$4 sm:$0xff]  }
 0x158   :  { %4219 = vmatprep.subr.bf16.mxu1 %v4937_v2 }
 0x15b   :  { %4220 = vmatpush3.bf16.msra.mxu1 %v4382_v59  ;;  %v4455_v59 = vld [vmem:[#allocation2 + $0xc20] ss:$16 sps:$4 sm:$0xff]  }
 0x15c   :  { %4221 = vmatprep.subr.bf16.mxu1 %v4937_v2 }
 0x15f   :  { %4222 = vmatpush3.bf16.msra.mxu1 %v4383_v60  ;;  %v4463_v60 = vld [vmem:[#allocation2 + $0xc44] ss:$16 sps:$4 sm:$0xff]  }
 0x160   :  { %4223 = vmatprep.subr.bf16.mxu1 %v4937_v2 }
 0x163   :  { %4224 = vmatpush3.bf16.msra.mxu1 %v4384_v61  ;;  %v4461_v61 = vld [vmem:[#allocation2 + $0xc40] ss:$16 sps:$4 sm:$0xff]  }
 0x164   :  { %4229 = vmatprep.subr.bf16.mxu1 %v4937_v2 }
 0x166   :  { %4226 = vmatmul.mubr.bf16.vlgmr.msra.gmra.mrb[4].mxu1 %v840_v62  ;;  %v4469_v62 = vld [vmem:[#allocation2 + $0xc64] ss:$16 sps:$4 sm:$0xff]  }
 0x167   :  { %4245 = vmatprep.mubr.msk.bf16.mxu1 %vm4938_vm4, %v4937_v2  ;;  %4230 = vmatpush3.bf16.msra.mxu1 %v4433_v5  ;;  %v4485_v5 = vld [vmem:[#allocation2 + $0xcc0] ss:$16 sps:$4 sm:$0xff]  }
 0x168   :  { %4231 = vmatprep.subr.bf16.mxu1 %v4937_v2 }
 0x16b   :  { %4232 = vmatpush3.bf16.msra.mxu1 %v4434_v7 }
 0x16c   :  { %4233 = vmatprep.subr.bf16.mxu1 %v4937_v2 }
 0x16f   :  { %4234 = vmatpush3.bf16.msra.mxu1 %v4435_v8  ;;  %v5048_v8 = vrot.slane %v617_v6, %v5004_v31 }
 0x170   :  { %4235 = vmatprep.subr.bf16.mxu1 %v4937_v2 }
 0x173   :  { %4236 = vmatpush3.bf16.msra.mxu1 %v4436_v9 }
 0x174   :  { %4237 = vmatprep.subr.bf16.mxu1 %v4937_v2 }
 0x177   :  { %4238 = vmatpush3.bf16.msra.mxu1 %v4437_v10  ;;  %v5053_v10 = vrot.slane %v617_v6, %v5007_v33  ;;  %v4523_v6 = vld [vmem:[#allocation2 + $0x884] ss:$16 sps:$4 sm:$0xff]  }
 0x178   :  { %4239 = vmatprep.subr.bf16.mxu1 %v4937_v2 }
 0x17b   :  { %4240 = vmatpush3.bf16.msra.mxu1 %v4438_v11 }
 0x17c   :  { %4241 = vmatprep.subr.bf16.mxu1 %v4937_v2 }
 0x17f   :  { %4242 = vmatpush3.bf16.msra.mxu1 %v4439_v12 }
 0x180   :  { %4243 = vmatprep.subr.bf16.mxu1 %v4937_v2 }
 0x183   :  { %4244 = vmatpush3.bf16.msra.mxu1 %v4440_v13 }
 0x184   :  { %1422 = vmatprep.subr.bf16.mxu1 %v4451_v56 }
 0x219   :  { %v561_v17 = vpop.f32.mrb[0].mxu1 }
 0x21a   :  { %v562_v18 = vadd.f32 %v561_v17, %v360_v15  ;;  %v563_v19 = vpop.f32.mrb[1].mxu1 }
 0x21b   :  { %v564_v20 = vadd.f32 %v563_v19, %v364_v16  ;;  %v565_v21 = vpop.f32.mrb[2].mxu1 }
 0x21c   :  { %v574_v22 = vmul.f32 0.01, %v562_v18  ;;  %v566_v23 = vadd.f32 %v565_v21, %v360_v15  ;;  %v567_v24 = vpop.f32.mrb[3].mxu1  ;;  %vm570_vm5 = vcmp.gt.f32.partialorder %v562_v18, 0.0  ;;  %v966_v15 = vld [vmem:[#allocation4 + $0x4] ss:$0 sm:$0xff] }
 0x21d   :  { %v575_v25 = vmul.f32 0.01, %v564_v20  ;;  %v568_v26 = vadd.f32 %v567_v24, %v364_v16  ;;  %vm571_vm6 = vcmp.gt.f32.partialorder %v564_v20, 0.0 }
 0x21e   :  { %vm572_vm7 = vcmp.gt.f32.partialorder %v566_v23, 0.0  ;;  %v576_v27 = vmul.f32 0.01, %v566_v23  ;;  %v578_v29 = vsel %vm570_vm5, %v562_v18, %v574_v22 }
 0x21f   :  { %vm573_vm8 = vcmp.gt.f32.partialorder %v568_v26, 0.0  ;;  %v577_v28 = vmul.f32 0.01, %v568_v26  ;;  %v579_v35 = vsel %vm571_vm6, %v564_v20, %v575_v25  ;;  %v4460_v25 = vld [vmem:[#allocation2 + $0xc2c] ss:$16 sps:$4 sm:$0xff]  }
 0x220   :  { %v580_v32 = vsel %vm572_vm7, %v566_v23, %v576_v27  ;;  %v4452_v23 = vld [vmem:[#allocation2 + $0xc08] ss:$16 sps:$4 sm:$0xff]   ;;  %v4466_v27 = vld [vmem:[#allocation2 + $0xc4c] ss:$16 sps:$4 sm:$0xff]  }
 0x221   :  { %v582_v34 = vpack.c.bf16 %v580_v32, %v578_v29  ;;  %v581_v36 = vsel %vm573_vm8, %v568_v26, %v577_v28  ;;  %v4458_v26 = vld [vmem:[#allocation2 + $0xc28] ss:$16 sps:$4 sm:$0xff]   ;;  %v4472_v29 = vld [vmem:[#allocation2 + $0xc6c] ss:$16 sps:$4 sm:$0xff]  }
 0x222   :  { %v583_v37 = vpack.c.bf16 %v581_v36, %v579_v35  ;;  %v4464_v28 = vld [vmem:[#allocation2 + $0xc48] ss:$16 sps:$4 sm:$0xff]   ;;  %v4484_v36 = vld [vmem:[#allocation2 + $0xcac] ss:$16 sps:$4 sm:$0xff]  }
 0x223   :  { %v4470_v32 = vld [vmem:[#allocation2 + $0xc68] ss:$16 sps:$4 sm:$0xff]  }
 0x224   :  { %821 = vmatprep.mubr.bf16.mxu0 %v583_v37  ;;  %v4476_v35 = vld [vmem:[#allocation2 + $0xc88] ss:$16 sps:$4 sm:$0xff]  }
 0x225   :  { %822 = vmatmul.mubr.bf16.vlgmr.msra.gmra.mrb[4].mxu0 %v582_v34  ;;  %v4478_v34 = vld [vmem:[#allocation2 + $0xc8c] ss:$16 sps:$4 sm:$0xff]   ;;  %v4482_v37 = vld [vmem:[#allocation2 + $0xca8] ss:$16 sps:$4 sm:$0xff]  }
 0x226   :  { %4265 = vmatprep.mubr.msk.bf16.mxu0 %vm4938_vm4, %v4937_v2  ;;  %4250 = vmatpush3.bf16.msra.mxu0 %v4441_v47  ;;  %v1075_v47 = vld [vmem:[#allocation4 + $0x5] ss:$0 sm:$0xff] }
 0x227   :  { %4251 = vmatprep.subr.bf16.mxu0 %v4937_v2 }
 0x22a   :  { %4252 = vmatpush3.bf16.msra.mxu0 %v4442_v48 }
 0x22b   :  { %4253 = vmatprep.subr.bf16.mxu0 %v4937_v2 }
 0x22e   :  { %4254 = vmatpush3.bf16.msra.mxu0 %v4443_v49 }
 0x22f   :  { %4255 = vmatprep.subr.bf16.mxu0 %v4937_v2 }
 0x232   :  { %4256 = vmatpush3.bf16.msra.mxu0 %v4444_v50 }
 0x233   :  { %4257 = vmatprep.subr.bf16.mxu0 %v4937_v2 }
 0x236   :  { %4258 = vmatpush3.bf16.msra.mxu0 %v4445_v51  ;;  %v5064_v51 = vld [vmem:[%s5106_s2] sm:$0xff] }
 0x237   :  { %4259 = vmatprep.subr.bf16.mxu0 %v4937_v2 }
 0x239   :  { %v940_v39 = vpop.f32.mrb[4].mxu1 }
 0x23a   :  { %v941_v40 = vadd.f32 %v940_v39, %v857_v38  ;;  %v4227_v41 = vpop.f32.mrb[5].mxu1  ;;  %4260 = vmatpush3.bf16.msra.mxu0 %v4446_v52  ;;  %v4490_v38 = vld [vmem:[#allocation2 + $0xccc] ss:$16 sps:$4 sm:$0xff]   ;;  %v4488_v39 = vld [vmem:[#allocation2 + $0xcc8] ss:$16 sps:$4 sm:$0xff]  }
 0x23b   :  { %v943_v42 = vpop.f32.mrb[6].mxu1  ;;  %4261 = vmatprep.subr.bf16.mxu0 %v4937_v2  ;;  %v4496_v41 = vld [vmem:[#allocation2 + $0xcec] ss:$16 sps:$4 sm:$0xff]  }
 0x23c   :  { %vm946_vm9 = vcmp.gt.f32.partialorder %v941_v40, 0.0  ;;  %v947_v43 = vmul.f32 0.01, %v941_v40  ;;  %v4228_v44 = vpop.f32.mrb[7].mxu1  ;;  %v4491_v42 = vld [vmem:[#allocation2 + $0xce0] ss:$16 sps:$4 sm:$0xff]  }
 0x23d   :  { %v4499_v44 = vld [vmem:[#allocation2 + $0x804] ss:$16 sps:$4 sm:$0xff]  }
 0x23e   :  { %v948_v45 = vsel %vm946_vm9, %v941_v40, %v947_v43  ;;  %4262 = vmatpush3.bf16.msra.mxu0 %v4447_v53  ;;  %v4493_v40 = vld [vmem:[#allocation2 + $0xce4] ss:$16 sps:$4 sm:$0xff]   ;;  %v4494_v43 = vld [vmem:[#allocation2 + $0xce8] ss:$16 sps:$4 sm:$0xff]   ;;  %v4497_v53 = vld [vmem:[#allocation2 + $0x800] ss:$16 sps:$4 sm:$0xff]  }
 0x23f   :  { %v949_v46 = vpack.c.bf16 %v948_v45, %v948_v45  ;;  %4263 = vmatprep.subr.bf16.mxu0 %v4937_v2  ;;  %v4475_v2 = vld [vmem:[#allocation2 + $0xc84] ss:$16 sps:$4 sm:$0xff]   ;;  %v4502_v45 = vld [vmem:[#allocation2 + $0x80c] ss:$16 sps:$4 sm:$0xff]  }
 0x241   :  { %4246 = vmatmul.mubr.bf16.vlgmr.msra.gmra.mrb[8].mxu1 %v949_v46  ;;  %v4939_v46 = vmov 0  }
 0x242   :  { %4264 = vmatpush3.bf16.msra.mxu0 %v4448_v54  ;;  %1423 = vmatpush1.bf16.msra.mxu1 %v4449_v55  ;;  %v4500_v54 = vld [vmem:[#allocation2 + $0x808] ss:$16 sps:$4 sm:$0xff]  }
 0x243   :  { %1463 = vmatprep.subr.bf16.mxu0 %v4454_v57  ;;  %1424 = vmatprep.subr.bf16.mxu1 %v4457_v58  ;;  %v4505_v57 = vld [vmem:[#allocation2 + $0x824] ss:$16 sps:$4 sm:$0xff]   ;;  %v4508_v58 = vld [vmem:[#allocation2 + $0x82c] ss:$16 sps:$4 sm:$0xff]  }
 0x244   :  { %1454 = vmatprep.mubr.bf16.mxu1 %v4939_v46 }
 0x246   :  { %1425 = vmatpush1.bf16.msra.mxu1 %v4455_v59  ;;  %v3835_v59 = vcombine.high %v5064_v51, %v5064_v51 }
 0x247   :  { %1426 = vmatprep.subr.bf16.mxu1 %v4463_v60  ;;  %v4503_v60 = vld [vmem:[#allocation2 + $0x820] ss:$16 sps:$4 sm:$0xff]  }
 0x24a   :  { %1427 = vmatpush1.bf16.msra.mxu1 %v4461_v61  ;;  %v4506_v61 = vld [vmem:[#allocation2 + $0x828] ss:$16 sps:$4 sm:$0xff]  }
 0x24b   :  { %1428 = vmatprep.subr.bf16.mxu1 %v4469_v62  ;;  %v4511_v62 = vld [vmem:[#allocation2 + $0x844] ss:$16 sps:$4 sm:$0xff]  }
 0x24e   :  { %1429 = vmatpush1.bf16.msra.mxu1 %v4467_v63  ;;  %v4514_v63 = vld [vmem:[#allocation2 + $0x84c] ss:$16 sps:$4 sm:$0xff]  }
 0x24f   :  { %1430 = vmatprep.subr.bf16.mxu1 %v4475_v2  ;;  %v4509_v2 = vld [vmem:[#allocation2 + $0x840] ss:$16 sps:$4 sm:$0xff]  }
 0x252   :  { %1431 = vmatpush1.bf16.msra.mxu1 %v4473_v0  ;;  %v4512_v0 = vld [vmem:[#allocation2 + $0x848] ss:$16 sps:$4 sm:$0xff]  }
 0x253   :  { %1432 = vmatprep.subr.bf16.mxu1 %v4481_v1  ;;  %v4517_v1 = vld [vmem:[#allocation2 + $0x864] ss:$16 sps:$4 sm:$0xff]  }
 0x256   :  { %1433 = vmatpush1.bf16.msra.mxu1 %v4479_v3  ;;  %v4520_v3 = vld [vmem:[#allocation2 + $0x86c] ss:$16 sps:$4 sm:$0xff]  }
 0x257   :  { %1434 = vmatprep.subr.bf16.mxu1 %v4487_v4  ;;  %v4515_v4 = vld [vmem:[#allocation2 + $0x860] ss:$16 sps:$4 sm:$0xff]  }
 0x25a   :  { %1435 = vmatpush1.bf16.msra.mxu1 %v4485_v5  ;;  %v4518_v5 = vld [vmem:[#allocation2 + $0x868] ss:$16 sps:$4 sm:$0xff]  }
 0x25b   :  { %1436 = vmatprep.subr.bf16.mxu1 %v4493_v40  ;;  %v4562_v40 = vld [vmem:[#allocation2 + $0x94c] ss:$16 sps:$4 sm:$0xff]  }
 0x25e   :  { %1437 = vmatpush1.bf16.msra.mxu1 %v4491_v42  ;;  %v4560_v42 = vld [vmem:[#allocation2 + $0x948] ss:$16 sps:$4 sm:$0xff]  }
 0x25f   :  { %1831 = vmatprep.subr.bf16.mxu1 %v4499_v44  ;;  %v4568_v44 = vld [vmem:[#allocation2 + $0x96c] ss:$16 sps:$4 sm:$0xff]  }
 0x2f8   :  { %v5045_v7 = vpop.f32.mrb[4].mxu0 }
 0x2f9   :  { %v5050_v9 = vpop.f32.mrb[5].mxu0 }
 0x2fa   :  { %v827_v11 = vpop.f32.mrb[6].mxu0 }
 0x2fb   :  { %v5056_v12 = vadd.f32 %v827_v11, %v5048_v8  ;;  %v829_v13 = vpop.f32.mrb[7].mxu0  ;;  %v4526_v11 = vld [vmem:[#allocation2 + $0x88c] ss:$16 sps:$4 sm:$0xff]  }
 0x2fc   :  { %v5059_v14 = vadd.f32 %v829_v13, %v5053_v10  ;;  %v4521_v13 = vld [vmem:[#allocation2 + $0x880] ss:$16 sps:$4 sm:$0xff]  }
 0x314   :  { %v1049_v16 = vpop.f32.mrb[8].mxu1 }
 0x315   :  { %v1050_v17 = vadd.f32 %v1049_v16, %v966_v15  ;;  %v4247_v18 = vpop.f32.mrb[9].mxu1  ;;  %v4524_v15 = vld [vmem:[#allocation2 + $0x888] ss:$16 sps:$4 sm:$0xff]   ;;  %v4529_v16 = vld [vmem:[#allocation2 + $0x8a4] ss:$16 sps:$4 sm:$0xff]  }
 0x316   :  { %v1052_v19 = vpop.f32.mrb[10].mxu1  ;;  %v4527_v18 = vld [vmem:[#allocation2 + $0x8a0] ss:$16 sps:$4 sm:$0xff]  }
 0x317   :  { %vm1055_vm10 = vcmp.gt.f32.partialorder %v1050_v17, 0.0  ;;  %v1056_v20 = vmul.f32 0.01, %v1050_v17  ;;  %v4248_v21 = vpop.f32.mrb[11].mxu1  ;;  %v4530_v19 = vld [vmem:[#allocation2 + $0x8a8] ss:$16 sps:$4 sm:$0xff]  }
 0x318   :  { %v4538_v21 = vld [vmem:[#allocation2 + $0x8cc] ss:$16 sps:$4 sm:$0xff]  }
 0x319   :  { %v1057_v22 = vsel %vm1055_vm10, %v1050_v17, %v1056_v20  ;;  %v4532_v17 = vld [vmem:[#allocation2 + $0x8ac] ss:$16 sps:$4 sm:$0xff]   ;;  %v4535_v20 = vld [vmem:[#allocation2 + $0x8c4] ss:$16 sps:$4 sm:$0xff]  }
 0x31a   :  { %v1058_v24 = vpack.c.bf16 %v1057_v22, %v1057_v22  ;;  %v4533_v22 = vld [vmem:[#allocation2 + $0x8c0] ss:$16 sps:$4 sm:$0xff]  }
 0x31c   :  { %4266 = vmatmul.mubr.bf16.vlgmr.msra.gmra.mrb[8].mxu0 %v1058_v24  ;;  %v4541_v24 = vld [vmem:[#allocation2 + $0x8e4] ss:$16 sps:$4 sm:$0xff]  }
 0x31d   :  { %1464 = vmatpush1.bf16.msra.mxu0 %v4452_v23  ;;  %1495 = vmatprep.mubr.bf16.mxu0 %v4939_v46  ;;  %v4536_v23 = vld [vmem:[#allocation2 + $0x8c8] ss:$16 sps:$4 sm:$0xff]  }
 0x31e   :  { %1465 = vmatprep.subr.bf16.mxu0 %v4460_v25  ;;  %v4544_v25 = vld [vmem:[#allocation2 + $0x8ec] ss:$16 sps:$4 sm:$0xff]   ;;  %v4566_v46 = vld [vmem:[#allocation2 + $0x968] ss:$16 sps:$4 sm:$0xff]  }
 0x321   :  { %1466 = vmatpush1.bf16.msra.mxu0 %v4458_v26  ;;  %v4539_v26 = vld [vmem:[#allocation2 + $0x8e0] ss:$16 sps:$4 sm:$0xff]  }
 0x322   :  { %1467 = vmatprep.subr.bf16.mxu0 %v4466_v27  ;;  %v4542_v27 = vld [vmem:[#allocation2 + $0x8e8] ss:$16 sps:$4 sm:$0xff]  }
 0x325   :  { %1468 = vmatpush1.bf16.msra.mxu0 %v4464_v28  ;;  %v4547_v28 = vld [vmem:[#allocation2 + $0x904] ss:$16 sps:$4 sm:$0xff]  }
 0x326   :  { %1469 = vmatprep.subr.bf16.mxu0 %v4472_v29  ;;  %v4550_v29 = vld [vmem:[#allocation2 + $0x90c] ss:$16 sps:$4 sm:$0xff]  }
 0x329   :  { %1470 = vmatpush1.bf16.msra.mxu0 %v4470_v32  ;;  %v4545_v32 = vld [vmem:[#allocation2 + $0x900] ss:$16 sps:$4 sm:$0xff]  }
 0x32a   :  { %1471 = vmatprep.subr.bf16.mxu0 %v4478_v34  ;;  %v4548_v34 = vld [vmem:[#allocation2 + $0x908] ss:$16 sps:$4 sm:$0xff]  }
 0x32d   :  { %1472 = vmatpush1.bf16.msra.mxu0 %v4476_v35  ;;  %v4553_v35 = vld [vmem:[#allocation2 + $0x924] ss:$16 sps:$4 sm:$0xff]  }
 0x32e   :  { %1473 = vmatprep.subr.bf16.mxu0 %v4484_v36  ;;  %v4556_v36 = vld [vmem:[#allocation2 + $0x92c] ss:$16 sps:$4 sm:$0xff]  }
 0x331   :  { %1474 = vmatpush1.bf16.msra.mxu0 %v4482_v37  ;;  %v4551_v37 = vld [vmem:[#allocation2 + $0x920] ss:$16 sps:$4 sm:$0xff]  }
 0x332   :  { %1475 = vmatprep.subr.bf16.mxu0 %v4490_v38  ;;  %v4554_v38 = vld [vmem:[#allocation2 + $0x928] ss:$16 sps:$4 sm:$0xff]  }
 0x335   :  { %1476 = vmatpush1.bf16.msra.mxu0 %v4488_v39  ;;  %v4559_v39 = vld [vmem:[#allocation2 + $0x944] ss:$16 sps:$4 sm:$0xff]  }
 0x336   :  { %1477 = vmatprep.subr.bf16.mxu0 %v4496_v41  ;;  %v4557_v41 = vld [vmem:[#allocation2 + $0x940] ss:$16 sps:$4 sm:$0xff]  }
 0x339   :  { %1478 = vmatpush1.bf16.msra.mxu0 %v4494_v43  ;;  %v4565_v43 = vld [vmem:[#allocation2 + $0x964] ss:$16 sps:$4 sm:$0xff]  }
 0x33a   :  { %1872 = vmatprep.subr.bf16.mxu0 %v4502_v45  ;;  %v4563_v45 = vld [vmem:[#allocation2 + $0x960] ss:$16 sps:$4 sm:$0xff]  }
 0x3ef   :  { %v1158_v48 = vpop.f32.mrb[8].mxu0 }
 0x3f0   :  { %v1159_v49 = vadd.f32 %v1158_v48, %v1075_v47  ;;  %v4267_v50 = vpop.f32.mrb[9].mxu0  ;;  %v4571_v47 = vld [vmem:[#allocation2 + $0x984] ss:$16 sps:$4 sm:$0xff]   ;;  %v4574_v48 = vld [vmem:[#allocation2 + $0x98c] ss:$16 sps:$4 sm:$0xff]  }
 0x3f1   :  { %v1161_v52 = vpop.f32.mrb[10].mxu0  ;;  %v4572_v50 = vld [vmem:[#allocation2 + $0x988] ss:$16 sps:$4 sm:$0xff]  }
 0x3f2   :  { %v1164_v55 = vpack.c.bf16 %v1159_v49, %v1159_v49  ;;  %v4268_v56 = vpop.f32.mrb[11].mxu0  ;;  %v4569_v49 = vld [vmem:[#allocation2 + $0x980] ss:$16 sps:$4 sm:$0xff]   ;;  %v4577_v52 = vld [vmem:[#allocation2 + $0x9a4] ss:$16 sps:$4 sm:$0xff]  }
 0x3f3   :  { %v4583_v56 = vld [vmem:[#allocation2 + $0x9c4] ss:$16 sps:$4 sm:$0xff]  }
 0x3f4   :  { %1455 = vmatmul.mubr.bf16.vlgmr.msra.gmra.mrb[12].mxu1 %v1164_v55  ;;  %1496 = vmatmul.mubr.bf16.vlgmr.msra.gmra.mrb[12].mxu0 %v1164_v55  ;;  %v4578_v55 = vld [vmem:[#allocation2 + $0x9a8] ss:$16 sps:$4 sm:$0xff]  }
 0x3f5   :  { %1832 = vmatpush1.bf16.msra.mxu1 %v4497_v53  ;;  %1873 = vmatpush1.bf16.msra.mxu0 %v4500_v54  ;;  %v4580_v53 = vld [vmem:[#allocation2 + $0x9ac] ss:$16 sps:$4 sm:$0xff]   ;;  %v4575_v54 = vld [vmem:[#allocation2 + $0x9a0] ss:$16 sps:$4 sm:$0xff]  }
 0x3f6   :  { %1833 = vmatprep.subr.bf16.mxu1 %v4505_v57  ;;  %1874 = vmatprep.subr.bf16.mxu0 %v4508_v58  ;;  %v4586_v57 = vld [vmem:[#allocation2 + $0x9cc] ss:$16 sps:$4 sm:$0xff]   ;;  %v4581_v58 = vld [vmem:[#allocation2 + $0x9c0] ss:$16 sps:$4 sm:$0xff]  }
 0x3f7   :  { %1863 = vmatprep.mubr.bf16.mxu1 %v3835_v59  ;;  %1904 = vmatprep.mubr.bf16.mxu0 %v3835_v59  ;;  %v4584_v59 = vld [vmem:[#allocation2 + $0x9c8] ss:$16 sps:$4 sm:$0xff]  }
 0x3f9   :  { %1834 = vmatpush1.bf16.msra.mxu1 %v4503_v60  ;;  %1875 = vmatpush1.bf16.msra.mxu0 %v4506_v61  ;;  %v4589_v60 = vld [vmem:[#allocation2 + $0x9e4] ss:$16 sps:$4 sm:$0xff]   ;;  %v4592_v61 = vld [vmem:[#allocation2 + $0x9ec] ss:$16 sps:$4 sm:$0xff]  }
 0x3fa   :  { %1835 = vmatprep.subr.bf16.mxu1 %v4511_v62  ;;  %1876 = vmatprep.subr.bf16.mxu0 %v4514_v63  ;;  %v4587_v62 = vld [vmem:[#allocation2 + $0x9e0] ss:$16 sps:$4 sm:$0xff]   ;;  %v4590_v63 = vld [vmem:[#allocation2 + $0x9e8] ss:$16 sps:$4 sm:$0xff]  }
 0x3fd   :  { %1836 = vmatpush1.bf16.msra.mxu1 %v4509_v2  ;;  %1877 = vmatpush1.bf16.msra.mxu0 %v4512_v0  ;;  %v4597_v2 = vld [vmem:[#allocation2 + $0x404] ss:$16 sps:$4 sm:$0xff]   ;;  %v4600_v0 = vld [vmem:[#allocation2 + $0x40c] ss:$16 sps:$4 sm:$0xff]  }
 0x3fe   :  { %1837 = vmatprep.subr.bf16.mxu1 %v4517_v1  ;;  %1878 = vmatprep.subr.bf16.mxu0 %v4520_v3  ;;  %v826_v1 = vadd.f32 %v5050_v9, %v5053_v10  ;;  %v3834_v3 = vcombine.low %v5064_v51, %v5064_v51  ;;  %v4604_v9 = vld [vmem:[#allocation2 + $0x428] ss:$16 sps:$4 sm:$0xff]   ;;  %v4609_v10 = vld [vmem:[#allocation2 + $0x444] ss:$16 sps:$4 sm:$0xff]   ;;  %v4612_v51 = vld [vmem:[#allocation2 + $0x44c] ss:$16 sps:$4 sm:$0xff]  }
 0x401   :  { %1838 = vmatpush1.bf16.msra.mxu1 %v4515_v4  ;;  %1879 = vmatpush1.bf16.msra.mxu0 %v4518_v5  ;;  %v4595_v4 = vld [vmem:[#allocation2 + $0x400] ss:$16 sps:$4 sm:$0xff]   ;;  %v4598_v5 = vld [vmem:[#allocation2 + $0x408] ss:$16 sps:$4 sm:$0xff]  }
 0x402   :  { %1839 = vmatprep.subr.bf16.mxu1 %v4523_v6  ;;  %1880 = vmatprep.subr.bf16.mxu0 %v4526_v11  ;;  %v4113_v6 = vpack.c.bf16 %v826_v1, %v826_v1  ;;  %v4603_v11 = vld [vmem:[#allocation2 + $0x424] ss:$16 sps:$4 sm:$0xff]  }
 0x403   :  { %v4681_v1 = vld [vmem:[#allocation2 + $0x5c4] ss:$16 sps:$4 sm:$0xff]  }
 0x405   :  { %1840 = vmatpush1.bf16.msra.mxu1 %v4521_v13  ;;  %1881 = vmatpush1.bf16.msra.mxu0 %v4524_v15  ;;  %v4606_v13 = vld [vmem:[#allocation2 + $0x42c] ss:$16 sps:$4 sm:$0xff]   ;;  %v4601_v15 = vld [vmem:[#allocation2 + $0x420] ss:$16 sps:$4 sm:$0xff]  }
 0x406   :  { %1841 = vmatprep.subr.bf16.mxu1 %v4529_v16  ;;  %1882 = vmatprep.subr.bf16.mxu0 %v4532_v17  ;;  %v4607_v16 = vld [vmem:[#allocation2 + $0x440] ss:$16 sps:$4 sm:$0xff]   ;;  %v4610_v17 = vld [vmem:[#allocation2 + $0x448] ss:$16 sps:$4 sm:$0xff]  }
 0x409   :  { %1842 = vmatpush1.bf16.msra.mxu1 %v4527_v18  ;;  %1883 = vmatpush1.bf16.msra.mxu0 %v4530_v19  ;;  %v4615_v18 = vld [vmem:[#allocation2 + $0x464] ss:$16 sps:$4 sm:$0xff]   ;;  %v4618_v19 = vld [vmem:[#allocation2 + $0x46c] ss:$16 sps:$4 sm:$0xff]  }
 0x40a   :  { %1843 = vmatprep.subr.bf16.mxu1 %v4535_v20  ;;  %1884 = vmatprep.subr.bf16.mxu0 %v4538_v21  ;;  %v4613_v20 = vld [vmem:[#allocation2 + $0x460] ss:$16 sps:$4 sm:$0xff]   ;;  %v4616_v21 = vld [vmem:[#allocation2 + $0x468] ss:$16 sps:$4 sm:$0xff]  }
 0x40d   :  { %1844 = vmatpush1.bf16.msra.mxu1 %v4533_v22  ;;  %1885 = vmatpush1.bf16.msra.mxu0 %v4536_v23  ;;  %v4621_v22 = vld [vmem:[#allocation2 + $0x484] ss:$16 sps:$4 sm:$0xff]   ;;  %v4624_v23 = vld [vmem:[#allocation2 + $0x48c] ss:$16 sps:$4 sm:$0xff]  }
 0x40e   :  { %1845 = vmatprep.subr.bf16.mxu1 %v4541_v24  ;;  %1886 = vmatprep.subr.bf16.mxu0 %v4544_v25  ;;  %v4619_v24 = vld [vmem:[#allocation2 + $0x480] ss:$16 sps:$4 sm:$0xff]   ;;  %v4622_v25 = vld [vmem:[#allocation2 + $0x488] ss:$16 sps:$4 sm:$0xff]  }
 0x411   :  { %1846 = vmatpush1.bf16.msra.mxu1 %v4539_v26  ;;  %1887 = vmatpush1.bf16.msra.mxu0 %v4542_v27  ;;  %v4627_v26 = vld [vmem:[#allocation2 + $0x4a4] ss:$16 sps:$4 sm:$0xff]   ;;  %v4630_v27 = vld [vmem:[#allocation2 + $0x4ac] ss:$16 sps:$4 sm:$0xff]  }
 0x412   :  { %1847 = vmatprep.subr.bf16.mxu1 %v4547_v28  ;;  %1888 = vmatprep.subr.bf16.mxu0 %v4550_v29  ;;  %v4625_v28 = vld [vmem:[#allocation2 + $0x4a0] ss:$16 sps:$4 sm:$0xff]   ;;  %v4628_v29 = vld [vmem:[#allocation2 + $0x4a8] ss:$16 sps:$4 sm:$0xff]  }
 0x415   :  { %1848 = vmatpush1.bf16.msra.mxu1 %v4545_v32  ;;  %1889 = vmatpush1.bf16.msra.mxu0 %v4548_v34  ;;  %v4633_v32 = vld [vmem:[#allocation2 + $0x4c4] ss:$16 sps:$4 sm:$0xff]   ;;  %v4636_v34 = vld [vmem:[#allocation2 + $0x4cc] ss:$16 sps:$4 sm:$0xff]  }
 0x416   :  { %1849 = vmatprep.subr.bf16.mxu1 %v4553_v35  ;;  %1890 = vmatprep.subr.bf16.mxu0 %v4556_v36  ;;  %v4631_v35 = vld [vmem:[#allocation2 + $0x4c0] ss:$16 sps:$4 sm:$0xff]   ;;  %v4634_v36 = vld [vmem:[#allocation2 + $0x4c8] ss:$16 sps:$4 sm:$0xff]  }
 0x419   :  { %1850 = vmatpush1.bf16.msra.mxu1 %v4551_v37  ;;  %1891 = vmatpush1.bf16.msra.mxu0 %v4554_v38  ;;  %v4639_v37 = vld [vmem:[#allocation2 + $0x4e4] ss:$16 sps:$4 sm:$0xff]   ;;  %v4642_v38 = vld [vmem:[#allocation2 + $0x4ec] ss:$16 sps:$4 sm:$0xff]  }
 0x41a   :  { %1851 = vmatprep.subr.bf16.mxu1 %v4559_v39  ;;  %1892 = vmatprep.subr.bf16.mxu0 %v4562_v40  ;;  %v4637_v39 = vld [vmem:[#allocation2 + $0x4e0] ss:$16 sps:$4 sm:$0xff]   ;;  %v4640_v40 = vld [vmem:[#allocation2 + $0x4e8] ss:$16 sps:$4 sm:$0xff]  }
 0x41d   :  { %1852 = vmatpush1.bf16.msra.mxu1 %v4557_v41  ;;  %1893 = vmatpush1.bf16.msra.mxu0 %v4560_v42  ;;  %v4645_v41 = vld [vmem:[#allocation2 + $0x504] ss:$16 sps:$4 sm:$0xff]   ;;  %v4648_v42 = vld [vmem:[#allocation2 + $0x50c] ss:$16 sps:$4 sm:$0xff]  }
 0x41e   :  { %1853 = vmatprep.subr.bf16.mxu1 %v4565_v43  ;;  %1894 = vmatprep.subr.bf16.mxu0 %v4568_v44  ;;  %v4643_v43 = vld [vmem:[#allocation2 + $0x500] ss:$16 sps:$4 sm:$0xff]   ;;  %v4646_v44 = vld [vmem:[#allocation2 + $0x508] ss:$16 sps:$4 sm:$0xff]  }
 0x421   :  { %1854 = vmatpush1.bf16.msra.mxu1 %v4563_v45  ;;  %1895 = vmatpush1.bf16.msra.mxu0 %v4566_v46  ;;  %v4651_v45 = vld [vmem:[#allocation2 + $0x524] ss:$16 sps:$4 sm:$0xff]   ;;  %v4654_v46 = vld [vmem:[#allocation2 + $0x52c] ss:$16 sps:$4 sm:$0xff]  }
 0x422   :  { %1855 = vmatprep.subr.bf16.mxu1 %v4571_v47  ;;  %1896 = vmatprep.subr.bf16.mxu0 %v4574_v48  ;;  %v4649_v47 = vld [vmem:[#allocation2 + $0x520] ss:$16 sps:$4 sm:$0xff]   ;;  %v4652_v48 = vld [vmem:[#allocation2 + $0x528] ss:$16 sps:$4 sm:$0xff]  }
 0x425   :  { %1856 = vmatpush1.bf16.msra.mxu1 %v4569_v49  ;;  %1897 = vmatpush1.bf16.msra.mxu0 %v4572_v50  ;;  %v4657_v49 = vld [vmem:[#allocation2 + $0x544] ss:$16 sps:$4 sm:$0xff]   ;;  %v4660_v50 = vld [vmem:[#allocation2 + $0x54c] ss:$16 sps:$4 sm:$0xff]  }
 0x426   :  { %1857 = vmatprep.subr.bf16.mxu1 %v4577_v52  ;;  %1898 = vmatprep.subr.bf16.mxu0 %v4580_v53  ;;  %v4655_v52 = vld [vmem:[#allocation2 + $0x540] ss:$16 sps:$4 sm:$0xff]   ;;  %v4658_v53 = vld [vmem:[#allocation2 + $0x548] ss:$16 sps:$4 sm:$0xff]  }
 0x429   :  { %1858 = vmatpush1.bf16.msra.mxu1 %v4575_v54  ;;  %1899 = vmatpush1.bf16.msra.mxu0 %v4578_v55  ;;  %v4663_v54 = vld [vmem:[#allocation2 + $0x564] ss:$16 sps:$4 sm:$0xff]   ;;  %v4666_v55 = vld [vmem:[#allocation2 + $0x56c] ss:$16 sps:$4 sm:$0xff]  }
 0x42a   :  { %1859 = vmatprep.subr.bf16.mxu1 %v4583_v56  ;;  %1900 = vmatprep.subr.bf16.mxu0 %v4586_v57  ;;  %v4661_v56 = vld [vmem:[#allocation2 + $0x560] ss:$16 sps:$4 sm:$0xff]   ;;  %v4664_v57 = vld [vmem:[#allocation2 + $0x568] ss:$16 sps:$4 sm:$0xff]  }
 0x42d   :  { %1860 = vmatpush1.bf16.msra.mxu1 %v4581_v58  ;;  %1901 = vmatpush1.bf16.msra.mxu0 %v4584_v59  ;;  %v4669_v58 = vld [vmem:[#allocation2 + $0x584] ss:$16 sps:$4 sm:$0xff]   ;;  %v4672_v59 = vld [vmem:[#allocation2 + $0x58c] ss:$16 sps:$4 sm:$0xff]  }
 0x42e   :  { %1861 = vmatprep.subr.bf16.mxu1 %v4589_v60  ;;  %1902 = vmatprep.subr.bf16.mxu0 %v4592_v61  ;;  %v4667_v60 = vld [vmem:[#allocation2 + $0x580] ss:$16 sps:$4 sm:$0xff]   ;;  %v4670_v61 = vld [vmem:[#allocation2 + $0x588] ss:$16 sps:$4 sm:$0xff]  }
 0x431   :  { %1862 = vmatpush1.bf16.msra.mxu1 %v4587_v62  ;;  %1903 = vmatpush1.bf16.msra.mxu0 %v4590_v63  ;;  %v4675_v62 = vld [vmem:[#allocation2 + $0x5a4] ss:$16 sps:$4 sm:$0xff]   ;;  %v4678_v63 = vld [vmem:[#allocation2 + $0x5ac] ss:$16 sps:$4 sm:$0xff]  }
 0x432   :  { %2301 = vmatprep.subr.bf16.mxu1 %v4597_v2  ;;  %2342 = vmatprep.subr.bf16.mxu0 %v4600_v0  ;;  %v4673_v2 = vld [vmem:[#allocation2 + $0x5a0] ss:$16 sps:$4 sm:$0xff]   ;;  %v4676_v0 = vld [vmem:[#allocation2 + $0x5a8] ss:$16 sps:$4 sm:$0xff]  }
 0x434   :  { %1864 = vmatmul.mubr.bf16.vlgmr.msra.gmra.mrb[16].mxu1 %v3834_v3  ;;  %1905 = vmatmul.mubr.bf16.vlgmr.msra.gmra.mrb[16].mxu0 %v3834_v3  ;;  %v4684_v3 = vld [vmem:[#allocation2 + $0x5cc] ss:$16 sps:$4 sm:$0xff]  }
 0x435   :  { %2302 = vmatpush1.bf16.msra.mxu1 %v4595_v4  ;;  %2333 = vmatprep.mubr.bf16.mxu1 %v4113_v6  ;;  %v4679_v4 = vld [vmem:[#allocation2 + $0x5c0] ss:$16 sps:$4 sm:$0xff]  }
 0x436   :  { %2343 = vmatpush1.bf16.msra.mxu0 %v4598_v5  ;;  %2374 = vmatprep.mubr.bf16.mxu0 %v4113_v6  ;;  %v4682_v5 = vld [vmem:[#allocation2 + $0x5c8] ss:$16 sps:$4 sm:$0xff]   ;;  %v4687_v6 = vld [vmem:[#allocation2 + $0x5e4] ss:$16 sps:$4 sm:$0xff]  }
 0x437   :  { %2303 = vmatprep.subr.bf16.mxu1 %v4603_v11  ;;  %2344 = vmatprep.subr.bf16.mxu0 %v4606_v13  ;;  %v4690_v11 = vld [vmem:[#allocation2 + $0x5ec] ss:$16 sps:$4 sm:$0xff]   ;;  %v4685_v13 = vld [vmem:[#allocation2 + $0x5e0] ss:$16 sps:$4 sm:$0xff]  }
 0x439   :  { %2304 = vmatpush1.bf16.msra.mxu1 %v4601_v15  ;;  %v824_v15 = vadd.f32 %v5045_v7, %v5048_v8  ;;  %v4697_v7 = vld [vmem:[#allocation2 + $0x620] ss:$16 sps:$4 sm:$0xff]   ;;  %v4700_v8 = vld [vmem:[#allocation2 + $0x628] ss:$16 sps:$4 sm:$0xff]  }
 0x43a   :  { %2345 = vmatpush1.bf16.msra.mxu0 %v4604_v9  ;;  %2305 = vmatprep.subr.bf16.mxu1 %v4609_v10  ;;  %v4688_v9 = vld [vmem:[#allocation2 + $0x5e8] ss:$16 sps:$4 sm:$0xff]   ;;  %v4693_v10 = vld [vmem:[#allocation2 + $0x604] ss:$16 sps:$4 sm:$0xff]  }
 0x43b   :  { %2346 = vmatprep.subr.bf16.mxu0 %v4612_v51  ;;  %v4696_v51 = vld [vmem:[#allocation2 + $0x60c] ss:$16 sps:$4 sm:$0xff]  }
 0x43d   :  { %2306 = vmatpush1.bf16.msra.mxu1 %v4607_v16  ;;  %v4691_v16 = vld [vmem:[#allocation2 + $0x600] ss:$16 sps:$4 sm:$0xff]  }
 0x43e   :  { %2347 = vmatpush1.bf16.msra.mxu0 %v4610_v17  ;;  %2307 = vmatprep.subr.bf16.mxu1 %v4615_v18  ;;  %v4112_v17 = vpack.c.bf16 %v824_v15, %v824_v15  ;;  %v4694_v18 = vld [vmem:[#allocation2 + $0x608] ss:$16 sps:$4 sm:$0xff]   ;;  %v4777_v15 = vld [vmem:[#allocation2 + $0x7c4] ss:$16 sps:$4 sm:$0xff]  }
 0x43f   :  { %2348 = vmatprep.subr.bf16.mxu0 %v4618_v19  ;;  %v4699_v19 = vld [vmem:[#allocation2 + $0x624] ss:$16 sps:$4 sm:$0xff]  }
 0x441   :  { %2308 = vmatpush1.bf16.msra.mxu1 %v4613_v20  ;;  %v4115_v20 = vpack.c.bf16 %v5059_v14, %v5059_v14  ;;  %v4714_v14 = vld [vmem:[#allocation2 + $0x66c] ss:$16 sps:$4 sm:$0xff]  }
 0x442   :  { %2349 = vmatpush1.bf16.msra.mxu0 %v4616_v21  ;;  %2309 = vmatprep.subr.bf16.mxu1 %v4621_v22  ;;  %v4702_v21 = vld [vmem:[#allocation2 + $0x62c] ss:$16 sps:$4 sm:$0xff]   ;;  %v4705_v22 = vld [vmem:[#allocation2 + $0x644] ss:$16 sps:$4 sm:$0xff]  }
 0x443   :  { %2350 = vmatprep.subr.bf16.mxu0 %v4624_v23  ;;  %v4708_v23 = vld [vmem:[#allocation2 + $0x64c] ss:$16 sps:$4 sm:$0xff]  }
 0x445   :  { %2310 = vmatpush1.bf16.msra.mxu1 %v4619_v24  ;;  %v4703_v24 = vld [vmem:[#allocation2 + $0x640] ss:$16 sps:$4 sm:$0xff]  }
 0x446   :  { %2351 = vmatpush1.bf16.msra.mxu0 %v4622_v25  ;;  %2311 = vmatprep.subr.bf16.mxu1 %v4627_v26  ;;  %v4706_v25 = vld [vmem:[#allocation2 + $0x648] ss:$16 sps:$4 sm:$0xff]   ;;  %v4711_v26 = vld [vmem:[#allocation2 + $0x664] ss:$16 sps:$4 sm:$0xff]  }
 0x447   :  { %2352 = vmatprep.subr.bf16.mxu0 %v4630_v27  ;;  %v4709_v27 = vld [vmem:[#allocation2 + $0x660] ss:$16 sps:$4 sm:$0xff]  }
 0x449   :  { %2312 = vmatpush1.bf16.msra.mxu1 %v4625_v28  ;;  %v4712_v28 = vld [vmem:[#allocation2 + $0x668] ss:$16 sps:$4 sm:$0xff]  }
 0x44a   :  { %2353 = vmatpush1.bf16.msra.mxu0 %v4628_v29  ;;  %2313 = vmatprep.subr.bf16.mxu1 %v4633_v32  ;;  %v4717_v29 = vld [vmem:[#allocation2 + $0x684] ss:$16 sps:$4 sm:$0xff]   ;;  %v4720_v32 = vld [vmem:[#allocation2 + $0x68c] ss:$16 sps:$4 sm:$0xff]  }
 0x44b   :  { %2354 = vmatprep.subr.bf16.mxu0 %v4636_v34  ;;  %v4715_v34 = vld [vmem:[#allocation2 + $0x680] ss:$16 sps:$4 sm:$0xff]  }
 0x44d   :  { %2314 = vmatpush1.bf16.msra.mxu1 %v4631_v35  ;;  %v4718_v35 = vld [vmem:[#allocation2 + $0x688] ss:$16 sps:$4 sm:$0xff]  }
 0x44e   :  { %2355 = vmatpush1.bf16.msra.mxu0 %v4634_v36  ;;  %2315 = vmatprep.subr.bf16.mxu1 %v4639_v37  ;;  %v4723_v36 = vld [vmem:[#allocation2 + $0x6a4] ss:$16 sps:$4 sm:$0xff]   ;;  %v4726_v37 = vld [vmem:[#allocation2 + $0x6ac] ss:$16 sps:$4 sm:$0xff]  }
 0x44f   :  { %2356 = vmatprep.subr.bf16.mxu0 %v4642_v38  ;;  %v4721_v38 = vld [vmem:[#allocation2 + $0x6a0] ss:$16 sps:$4 sm:$0xff]  }
 0x451   :  { %2316 = vmatpush1.bf16.msra.mxu1 %v4637_v39  ;;  %v4724_v39 = vld [vmem:[#allocation2 + $0x6a8] ss:$16 sps:$4 sm:$0xff]  }
 0x452   :  { %2357 = vmatpush1.bf16.msra.mxu0 %v4640_v40  ;;  %2317 = vmatprep.subr.bf16.mxu1 %v4645_v41  ;;  %v4729_v40 = vld [vmem:[#allocation2 + $0x6c4] ss:$16 sps:$4 sm:$0xff]   ;;  %v4732_v41 = vld [vmem:[#allocation2 + $0x6cc] ss:$16 sps:$4 sm:$0xff]  }
 0x453   :  { %2358 = vmatprep.subr.bf16.mxu0 %v4648_v42  ;;  %v4727_v42 = vld [vmem:[#allocation2 + $0x6c0] ss:$16 sps:$4 sm:$0xff]  }
 0x455   :  { %2318 = vmatpush1.bf16.msra.mxu1 %v4643_v43  ;;  %v4730_v43 = vld [vmem:[#allocation2 + $0x6c8] ss:$16 sps:$4 sm:$0xff]  }
 0x456   :  { %2359 = vmatpush1.bf16.msra.mxu0 %v4646_v44  ;;  %2319 = vmatprep.subr.bf16.mxu1 %v4651_v45  ;;  %v4735_v44 = vld [vmem:[#allocation2 + $0x6e4] ss:$16 sps:$4 sm:$0xff]   ;;  %v4738_v45 = vld [vmem:[#allocation2 + $0x6ec] ss:$16 sps:$4 sm:$0xff]  }
 0x457   :  { %2360 = vmatprep.subr.bf16.mxu0 %v4654_v46  ;;  %v4733_v46 = vld [vmem:[#allocation2 + $0x6e0] ss:$16 sps:$4 sm:$0xff]  }
 0x459   :  { %2320 = vmatpush1.bf16.msra.mxu1 %v4649_v47  ;;  %v4736_v47 = vld [vmem:[#allocation2 + $0x6e8] ss:$16 sps:$4 sm:$0xff]  }
 0x45a   :  { %2361 = vmatpush1.bf16.msra.mxu0 %v4652_v48  ;;  %2321 = vmatprep.subr.bf16.mxu1 %v4657_v49  ;;  %v4741_v48 = vld [vmem:[#allocation2 + $0x704] ss:$16 sps:$4 sm:$0xff]   ;;  %v4744_v49 = vld [vmem:[#allocation2 + $0x70c] ss:$16 sps:$4 sm:$0xff]  }
 0x45b   :  { %2362 = vmatprep.subr.bf16.mxu0 %v4660_v50  ;;  %v4739_v50 = vld [vmem:[#allocation2 + $0x700] ss:$16 sps:$4 sm:$0xff]  }
 0x45d   :  { %2322 = vmatpush1.bf16.msra.mxu1 %v4655_v52  ;;  %v4742_v52 = vld [vmem:[#allocation2 + $0x708] ss:$16 sps:$4 sm:$0xff]  }
 0x45e   :  { %2363 = vmatpush1.bf16.msra.mxu0 %v4658_v53  ;;  %2323 = vmatprep.subr.bf16.mxu1 %v4663_v54  ;;  %v4747_v53 = vld [vmem:[#allocation2 + $0x724] ss:$16 sps:$4 sm:$0xff]   ;;  %v4750_v54 = vld [vmem:[#allocation2 + $0x72c] ss:$16 sps:$4 sm:$0xff]  }
 0x45f   :  { %2364 = vmatprep.subr.bf16.mxu0 %v4666_v55  ;;  %v4745_v55 = vld [vmem:[#allocation2 + $0x720] ss:$16 sps:$4 sm:$0xff]  }
 0x461   :  { %2324 = vmatpush1.bf16.msra.mxu1 %v4661_v56  ;;  %v4748_v56 = vld [vmem:[#allocation2 + $0x728] ss:$16 sps:$4 sm:$0xff]  }
 0x462   :  { %2365 = vmatpush1.bf16.msra.mxu0 %v4664_v57  ;;  %2325 = vmatprep.subr.bf16.mxu1 %v4669_v58  ;;  %v4753_v57 = vld [vmem:[#allocation2 + $0x744] ss:$16 sps:$4 sm:$0xff]   ;;  %v4756_v58 = vld [vmem:[#allocation2 + $0x74c] ss:$16 sps:$4 sm:$0xff]  }
 0x463   :  { %2366 = vmatprep.subr.bf16.mxu0 %v4672_v59  ;;  %v4751_v59 = vld [vmem:[#allocation2 + $0x740] ss:$16 sps:$4 sm:$0xff]  }
 0x465   :  { %2326 = vmatpush1.bf16.msra.mxu1 %v4667_v60  ;;  %v4754_v60 = vld [vmem:[#allocation2 + $0x748] ss:$16 sps:$4 sm:$0xff]  }
 0x466   :  { %2367 = vmatpush1.bf16.msra.mxu0 %v4670_v61  ;;  %2327 = vmatprep.subr.bf16.mxu1 %v4675_v62  ;;  %v4759_v61 = vld [vmem:[#allocation2 + $0x764] ss:$16 sps:$4 sm:$0xff]   ;;  %v4762_v62 = vld [vmem:[#allocation2 + $0x76c] ss:$16 sps:$4 sm:$0xff]  }
 0x467   :  { %2368 = vmatprep.subr.bf16.mxu0 %v4678_v63  ;;  %v4757_v63 = vld [vmem:[#allocation2 + $0x760] ss:$16 sps:$4 sm:$0xff]  }
 0x469   :  { %2328 = vmatpush1.bf16.msra.mxu1 %v4673_v2  ;;  %v4760_v2 = vld [vmem:[#allocation2 + $0x768] ss:$16 sps:$4 sm:$0xff]  }
 0x46a   :  { %2369 = vmatpush1.bf16.msra.mxu0 %v4676_v0  ;;  %2329 = vmatprep.subr.bf16.mxu1 %v4681_v1  ;;  %v4765_v0 = vld [vmem:[#allocation2 + $0x784] ss:$16 sps:$4 sm:$0xff]   ;;  %v4768_v1 = vld [vmem:[#allocation2 + $0x78c] ss:$16 sps:$4 sm:$0xff]  }
 0x46b   :  { %2370 = vmatprep.subr.bf16.mxu0 %v4684_v3  ;;  %v4763_v3 = vld [vmem:[#allocation2 + $0x780] ss:$16 sps:$4 sm:$0xff]  }
 0x46d   :  { %2330 = vmatpush1.bf16.msra.mxu1 %v4679_v4  ;;  %v4766_v4 = vld [vmem:[#allocation2 + $0x788] ss:$16 sps:$4 sm:$0xff]  }
 0x46e   :  { %2371 = vmatpush1.bf16.msra.mxu0 %v4682_v5  ;;  %2331 = vmatprep.subr.bf16.mxu1 %v4687_v6  ;;  %v4771_v5 = vld [vmem:[#allocation2 + $0x7a4] ss:$16 sps:$4 sm:$0xff]   ;;  %v4774_v6 = vld [vmem:[#allocation2 + $0x7ac] ss:$16 sps:$4 sm:$0xff]  }
 0x46f   :  { %2372 = vmatprep.subr.bf16.mxu0 %v4690_v11  ;;  %v4769_v11 = vld [vmem:[#allocation2 + $0x7a0] ss:$16 sps:$4 sm:$0xff]  }
 0x471   :  { %2332 = vmatpush1.bf16.msra.mxu1 %v4685_v13  ;;  %v4772_v13 = vld [vmem:[#allocation2 + $0x7a8] ss:$16 sps:$4 sm:$0xff]  }
 0x472   :  { %2373 = vmatpush1.bf16.msra.mxu0 %v4688_v9  ;;  %2775 = vmatprep.subr.bf16.mxu1 %v4693_v10  ;;  %v4780_v9 = vld [vmem:[#allocation2 + $0x7cc] ss:$16 sps:$4 sm:$0xff]   ;;  %v4775_v10 = vld [vmem:[#allocation2 + $0x7c0] ss:$16 sps:$4 sm:$0xff]  }
 0x473   :  { %2816 = vmatprep.subr.bf16.mxu0 %v4696_v51  ;;  %v4778_v51 = vld [vmem:[#allocation2 + $0x7c8] ss:$16 sps:$4 sm:$0xff]  }
 0x474   :  { %2334 = vmatmul.mubr.bf16.vlgmr.msra.gmra.mrb[20].mxu1 %v4112_v17 }
 0x475   :  { %2375 = vmatmul.mubr.bf16.vlgmr.msra.gmra.mrb[20].mxu0 %v4112_v17  ;;  %2776 = vmatpush1.bf16.msra.mxu1 %v4691_v16  ;;  %v4783_v16 = vld [vmem:[#allocation2 + $0x7e4] ss:$16 sps:$4 sm:$0xff]   ;;  %v4786_v17 = vld [vmem:[#allocation2 + $0x7ec] ss:$16 sps:$4 sm:$0xff]  }
 0x476   :  { %2807 = vmatprep.mubr.bf16.mxu1 %v4115_v20  ;;  %2817 = vmatpush1.bf16.msra.mxu0 %v4694_v18  ;;  %v4781_v18 = vld [vmem:[#allocation2 + $0x7e0] ss:$16 sps:$4 sm:$0xff]  }
 0x477   :  { %2848 = vmatprep.mubr.bf16.mxu0 %v4115_v20  ;;  %2777 = vmatprep.subr.bf16.mxu1 %v4699_v19  ;;  %v4784_v19 = vld [vmem:[#allocation2 + $0x7e8] ss:$16 sps:$4 sm:$0xff]   ;;  %v4114_v20 = vpack.c.bf16 %v5056_v12, %v5056_v12 }
 0x478   :  { %2818 = vmatprep.subr.bf16.mxu0 %v4702_v21  ;;  %v4790_v12 = vld [vmem:[#allocation2 + $0x228] ss:$16 sps:$4 sm:$0xff]  }
 0x479   :  { %2778 = vmatpush1.bf16.msra.mxu1 %v4697_v7 }
 0x47a   :  { %2819 = vmatpush1.bf16.msra.mxu0 %v4700_v8  ;;  %2779 = vmatprep.subr.bf16.mxu1 %v4705_v22 }
 0x47b   :  { %2820 = vmatprep.subr.bf16.mxu0 %v4708_v23 }
 0x47d   :  { %2780 = vmatpush1.bf16.msra.mxu1 %v4703_v24 }
 0x47e   :  { %2821 = vmatpush1.bf16.msra.mxu0 %v4706_v25  ;;  %2781 = vmatprep.subr.bf16.mxu1 %v4711_v26 }
 0x47f   :  { %2822 = vmatprep.subr.bf16.mxu0 %v4714_v14  ;;  %v4787_v14 = vld [vmem:[#allocation2 + $0x208] ss:$16 sps:$4 sm:$0xff]  }
 0x481   :  { %2782 = vmatpush1.bf16.msra.mxu1 %v4709_v27  ;;  %v4789_v27 = vld [vmem:[#allocation2 + $0x20c] ss:$16 sps:$4 sm:$0xff]  }
 0x482   :  { %2823 = vmatpush1.bf16.msra.mxu0 %v4712_v28  ;;  %2783 = vmatprep.subr.bf16.mxu1 %v4717_v29  ;;  %v4792_v28 = vld [vmem:[#allocation2 + $0x22c] ss:$16 sps:$4 sm:$0xff]  }
 0x483   :  { %2824 = vmatprep.subr.bf16.mxu0 %v4720_v32  ;;  %v4795_v29 = vld [vmem:[#allocation2 + $0x24c] ss:$16 sps:$4 sm:$0xff]   ;;  %v4793_v32 = vld [vmem:[#allocation2 + $0x248] ss:$16 sps:$4 sm:$0xff]  }
 0x485   :  { %2784 = vmatpush1.bf16.msra.mxu1 %v4715_v34  ;;  %v4798_v34 = vld [vmem:[#allocation2 + $0x26c] ss:$16 sps:$4 sm:$0xff]  }
 0x486   :  { %2825 = vmatpush1.bf16.msra.mxu0 %v4718_v35  ;;  %2785 = vmatprep.subr.bf16.mxu1 %v4723_v36  ;;  %v4796_v35 = vld [vmem:[#allocation2 + $0x268] ss:$16 sps:$4 sm:$0xff]   ;;  %v4801_v36 = vld [vmem:[#allocation2 + $0x28c] ss:$16 sps:$4 sm:$0xff]  }
 0x487   :  { %2826 = vmatprep.subr.bf16.mxu0 %v4726_v37  ;;  %v4799_v37 = vld [vmem:[#allocation2 + $0x288] ss:$16 sps:$4 sm:$0xff]  }
 0x489   :  { %2786 = vmatpush1.bf16.msra.mxu1 %v4721_v38  ;;  %v4804_v38 = vld [vmem:[#allocation2 + $0x2ac] ss:$16 sps:$4 sm:$0xff]  }
 0x48a   :  { %2827 = vmatpush1.bf16.msra.mxu0 %v4724_v39  ;;  %2787 = vmatprep.subr.bf16.mxu1 %v4729_v40  ;;  %v4802_v39 = vld [vmem:[#allocation2 + $0x2a8] ss:$16 sps:$4 sm:$0xff]   ;;  %v4807_v40 = vld [vmem:[#allocation2 + $0x2cc] ss:$16 sps:$4 sm:$0xff]  }
 0x48b   :  { %2828 = vmatprep.subr.bf16.mxu0 %v4732_v41  ;;  %v4805_v41 = vld [vmem:[#allocation2 + $0x2c8] ss:$16 sps:$4 sm:$0xff]  }
 0x48d   :  { %2788 = vmatpush1.bf16.msra.mxu1 %v4727_v42  ;;  %v4810_v42 = vld [vmem:[#allocation2 + $0x2ec] ss:$16 sps:$4 sm:$0xff]  }
 0x48e   :  { %2829 = vmatpush1.bf16.msra.mxu0 %v4730_v43  ;;  %2789 = vmatprep.subr.bf16.mxu1 %v4735_v44  ;;  %v4808_v43 = vld [vmem:[#allocation2 + $0x2e8] ss:$16 sps:$4 sm:$0xff]   ;;  %v4813_v44 = vld [vmem:[#allocation2 + $0x30c] ss:$16 sps:$4 sm:$0xff]  }
 0x48f   :  { %2830 = vmatprep.subr.bf16.mxu0 %v4738_v45  ;;  %v4811_v45 = vld [vmem:[#allocation2 + $0x308] ss:$16 sps:$4 sm:$0xff]  }
 0x491   :  { %2790 = vmatpush1.bf16.msra.mxu1 %v4733_v46  ;;  %v4816_v46 = vld [vmem:[#allocation2 + $0x32c] ss:$16 sps:$4 sm:$0xff]  }
 0x492   :  { %2831 = vmatpush1.bf16.msra.mxu0 %v4736_v47  ;;  %2791 = vmatprep.subr.bf16.mxu1 %v4741_v48  ;;  %v4814_v47 = vld [vmem:[#allocation2 + $0x328] ss:$16 sps:$4 sm:$0xff]   ;;  %v4819_v48 = vld [vmem:[#allocation2 + $0x34c] ss:$16 sps:$4 sm:$0xff]  }
 0x493   :  { %2832 = vmatprep.subr.bf16.mxu0 %v4744_v49  ;;  %v4817_v49 = vld [vmem:[#allocation2 + $0x348] ss:$16 sps:$4 sm:$0xff]  }
 0x495   :  { %2792 = vmatpush1.bf16.msra.mxu1 %v4739_v50  ;;  %v4822_v50 = vld [vmem:[#allocation2 + $0x36c] ss:$16 sps:$4 sm:$0xff]  }
 0x496   :  { %2833 = vmatpush1.bf16.msra.mxu0 %v4742_v52  ;;  %2793 = vmatprep.subr.bf16.mxu1 %v4747_v53  ;;  %v4820_v52 = vld [vmem:[#allocation2 + $0x368] ss:$16 sps:$4 sm:$0xff]   ;;  %v4825_v53 = vld [vmem:[#allocation2 + $0x38c] ss:$16 sps:$4 sm:$0xff]  }
 0x497   :  { %2834 = vmatprep.subr.bf16.mxu0 %v4750_v54  ;;  %v4823_v54 = vld [vmem:[#allocation2 + $0x388] ss:$16 sps:$4 sm:$0xff]  }
 0x499   :  { %2794 = vmatpush1.bf16.msra.mxu1 %v4745_v55 }
 0x49a   :  { %2835 = vmatpush1.bf16.msra.mxu0 %v4748_v56  ;;  %2795 = vmatprep.subr.bf16.mxu1 %v4753_v57  ;;  %v4828_v57 = vld [vmem:[#allocation2 + $0x3ac] ss:$16 sps:$4 sm:$0xff]  }
 0x49b   :  { %2836 = vmatprep.subr.bf16.mxu0 %v4756_v58 }
 0x49d   :  { %2796 = vmatpush1.bf16.msra.mxu1 %v4751_v59 }
 0x49e   :  { %2837 = vmatpush1.bf16.msra.mxu0 %v4754_v60  ;;  %2797 = vmatprep.subr.bf16.mxu1 %v4759_v61 }
 0x49f   :  { %2838 = vmatprep.subr.bf16.mxu0 %v4762_v62 }
 0x4a1   :  { %2798 = vmatpush1.bf16.msra.mxu1 %v4757_v63 }
 0x4a2   :  { %2839 = vmatpush1.bf16.msra.mxu0 %v4760_v2  ;;  %2799 = vmatprep.subr.bf16.mxu1 %v4765_v0 }
 0x4a3   :  { %2840 = vmatprep.subr.bf16.mxu0 %v4768_v1  ;;  %v4826_v1 = vld [vmem:[#allocation2 + $0x3a8] ss:$16 sps:$4 sm:$0xff]  }
 0x4a5   :  { %2800 = vmatpush1.bf16.msra.mxu1 %v4763_v3 }
 0x4a6   :  { %2841 = vmatpush1.bf16.msra.mxu0 %v4766_v4  ;;  %2801 = vmatprep.subr.bf16.mxu1 %v4771_v5  ;;  %v4831_v5 = vld [vmem:[#allocation2 + $0x3cc] ss:$16 sps:$4 sm:$0xff]  }
 0x4a7   :  { %2842 = vmatprep.subr.bf16.mxu0 %v4774_v6  ;;  %v4829_v6 = vld [vmem:[#allocation2 + $0x3c8] ss:$16 sps:$4 sm:$0xff]  }
 0x4a9   :  { %2802 = vmatpush1.bf16.msra.mxu1 %v4769_v11  ;;  %v4834_v11 = vld [vmem:[#allocation2 + $0x3ec] ss:$16 sps:$4 sm:$0xff]  }
 0x4aa   :  { %2843 = vmatpush1.bf16.msra.mxu0 %v4772_v13  ;;  %2803 = vmatprep.subr.bf16.mxu1 %v4777_v15  ;;  %v4832_v13 = vld [vmem:[#allocation2 + $0x3e8] ss:$16 sps:$4 sm:$0xff]   ;;  %v4835_v15 = vld [vmem:[#allocation2 + $0xb00] ss:$16 sps:$4 sm:$0xff]  }
 0x4ab   :  { %2844 = vmatprep.subr.bf16.mxu0 %v4780_v9  ;;  %v4836_v9 = vld [vmem:[#allocation2 + $0xa00] ss:$16 sps:$4 sm:$0xff]  }
 0x4ad   :  { %2804 = vmatpush1.bf16.msra.mxu1 %v4775_v10  ;;  %v4837_v10 = vld [vmem:[#allocation2 + $0xb20] ss:$16 sps:$4 sm:$0xff]  }
 0x4ae   :  { %2845 = vmatpush1.bf16.msra.mxu0 %v4778_v51  ;;  %2805 = vmatprep.subr.bf16.mxu1 %v4783_v16  ;;  %v4838_v51 = vld [vmem:[#allocation2 + $0xa20] ss:$16 sps:$4 sm:$0xff]  }
 0x4af   :  { %2846 = vmatprep.subr.bf16.mxu0 %v4786_v17  ;;  %v4839_v16 = vld [vmem:[#allocation2 + $0xb40] ss:$16 sps:$4 sm:$0xff]  }
 0x4b0   :  { %v4840_v17 = vld [vmem:[#allocation2 + $0xa40] ss:$16 sps:$4 sm:$0xff]  }
 0x4b1   :  { %2806 = vmatpush1.bf16.msra.mxu1 %v4781_v18  ;;  %v4841_v18 = vld [vmem:[#allocation2 + $0xb60] ss:$16 sps:$4 sm:$0xff]  }
 0x4b2   :  { %2847 = vmatpush1.bf16.msra.mxu0 %v4784_v19  ;;  %3109 = vmatprep.subr.bf16.mxu1 %v4789_v27  ;;  %v4842_v19 = vld [vmem:[#allocation2 + $0xa60] ss:$16 sps:$4 sm:$0xff]  }
 0x4b3   :  { %4143 = vmatprep.subr.bf16.mxu0 %v4835_v15 }
 0x4b4   :  { %2808 = vmatmul.mubr.bf16.vlgmr.msra.gmra.mrb[24].mxu1 %v4114_v20 }
 0x4b5   :  { %2849 = vmatmul.mubr.bf16.vlgmr.msra.gmra.mrb[24].mxu0 %v4114_v20  ;;  %3110 = vmatpush1.bf16.msra.mxu1 %v4787_v14  ;;  %v4843_v20 = vld [vmem:[#allocation2 + $0xb80] ss:$16 sps:$4 sm:$0xff]  }
 0x4b6   :  { %3111 = vmatprep.subr.bf16.mxu1 %v4792_v28  ;;  %4144 = vmatpush3.bf16.msra.mxu0 %v4836_v9 }
 0x4b7   :  { %4145 = vmatprep.subr.bf16.mxu0 %v4837_v10 }
 0x4b9   :  { %3112 = vmatpush1.bf16.msra.mxu1 %v4790_v12 }
 0x4ba   :  { %3113 = vmatprep.subr.bf16.mxu1 %v4795_v29  ;;  %4146 = vmatpush3.bf16.msra.mxu0 %v4838_v51 }
 0x4bb   :  { %4147 = vmatprep.subr.bf16.mxu0 %v4839_v16 }
 0x4bd   :  { %3114 = vmatpush1.bf16.msra.mxu1 %v4793_v32 }
 0x4be   :  { %3115 = vmatprep.subr.bf16.mxu1 %v4798_v34  ;;  %4148 = vmatpush3.bf16.msra.mxu0 %v4840_v17 }
 0x4bf   :  { %4149 = vmatprep.subr.bf16.mxu0 %v4841_v18 }
 0x4c1   :  { %3116 = vmatpush1.bf16.msra.mxu1 %v4796_v35  ;;  %v2862_v35 = vld [vmem:[#allocation4 + $0x6] ss:$8 sm:$0xf] }
 0x4c2   :  { %3117 = vmatprep.subr.bf16.mxu1 %v4801_v36  ;;  %4150 = vmatpush3.bf16.msra.mxu0 %v4842_v19  ;;  %v2874_v36 = vsub.s32 2, %v5001_v30 }
 0x4c3   :  { %4151 = vmatprep.subr.bf16.mxu0 %v4843_v20 }
 0x4c5   :  { %3118 = vmatpush1.bf16.msra.mxu1 %v4799_v37  ;;  %v2878_v37 = vsub.s32 3, %v5001_v30 }
 0x4c6   :  { %3119 = vmatprep.subr.bf16.mxu1 %v4804_v38  ;;  %v2867_v38 = vrot.slane %v2862_v35, %v5004_v31 }
 0x4c7   :  { %v5078_v21 = vpop.f32.mrb[12].mxu1  ;;  %v5080_v7 = vpop.f32.mrb[12].mxu0 }
 0x4c8   :  { %v5082_v8 = vpop.f32.mrb[13].mxu1  ;;  %v5084_v22 = vpop.f32.mrb[13].mxu0 }
 0x4c9   :  { %v1460_v23 = vpop.f32.mrb[14].mxu1  ;;  %v1501_v24 = vpop.f32.mrb[14].mxu0  ;;  %3120 = vmatpush1.bf16.msra.mxu1 %v4802_v39 }
 0x4ca   :  { %v1461_v25 = vpop.f32.mrb[15].mxu1  ;;  %v1502_v26 = vpop.f32.mrb[15].mxu0  ;;  %3121 = vmatprep.subr.bf16.mxu1 %v4807_v40  ;;  %v2875_v40 = vrot.slane %v2862_v35, %v2874_v36  ;;  %v4865_v36 = vld [vmem:[#allocation2 + $0xbe4] ss:$16 sps:$4 sm:$0xff]  }
 0x4cd   :  { %3122 = vmatpush1.bf16.msra.mxu1 %v4805_v41  ;;  %v2871_v41 = vrot.slane %v2862_v35, %v5007_v33 }
 0x4ce   :  { %3123 = vmatprep.subr.bf16.mxu1 %v4810_v42 }
 0x4d1   :  { %3124 = vmatpush1.bf16.msra.mxu1 %v4808_v43 }
 0x4d2   :  { %3125 = vmatprep.subr.bf16.mxu1 %v4813_v44 }
 0x4d5   :  { %3126 = vmatpush1.bf16.msra.mxu1 %v4811_v45  ;;  %v2879_v45 = vrot.slane %v2862_v35, %v2878_v37  ;;  %v4864_v35 = vld [vmem:[#allocation2 + $0xac4] ss:$16 sps:$4 sm:$0xff]  }
 0x4d6   :  { %3127 = vmatprep.subr.bf16.mxu1 %v4816_v46 }
 0x4d9   :  { %3128 = vmatpush1.bf16.msra.mxu1 %v4814_v47 }
 0x4da   :  { %3129 = vmatprep.subr.bf16.mxu1 %v4819_v48 }
 0x4dd   :  { %3130 = vmatpush1.bf16.msra.mxu1 %v4817_v49 }
 0x4de   :  { %3131 = vmatprep.subr.bf16.mxu1 %v4822_v50 }
 0x4e1   :  { %3132 = vmatpush1.bf16.msra.mxu1 %v4820_v52 }
 0x4e2   :  { %3133 = vmatprep.subr.bf16.mxu1 %v4825_v53 }
 0x4e5   :  { %3134 = vmatpush1.bf16.msra.mxu1 %v4823_v54 }
 0x4e6   :  { %3135 = vmatprep.subr.bf16.mxu1 %v4828_v57 }
 0x4e9   :  { %3136 = vmatpush1.bf16.msra.mxu1 %v4826_v1  ;;  %v4849_v1 = vld [vmem:[#allocation2 + $0xbe0] ss:$16 sps:$4 sm:$0xff]  }
 0x4ea   :  { %3137 = vmatprep.subr.bf16.mxu1 %v4831_v5  ;;  %v2937_v5 = vld [vmem:[#allocation4 + $0x7] ss:$8 sm:$0x3] }
 0x4ed   :  { %3138 = vmatpush1.bf16.msra.mxu1 %v4829_v6  ;;  %v2942_v6 = vrot.slane %v2937_v5, %v5004_v31 }
 0x4ee   :  { %3139 = vmatprep.subr.bf16.mxu1 %v4834_v11  ;;  %v2946_v11 = vrot.slane %v2937_v5, %v5007_v33 }
 0x4f1   :  { %3140 = vmatpush1.bf16.msra.mxu1 %v4832_v13 }
 0x507   :  { %v1865_v55 = vpop.f32.mrb[16].mxu1  ;;  %v1906_v56 = vpop.f32.mrb[16].mxu0 }
 0x508   :  { %v1866_v58 = vadd.f32 %v1865_v55, %v5078_v21  ;;  %v1907_v59 = vadd.f32 %v1906_v56, %v5080_v7  ;;  %v1867_v60 = vpop.f32.mrb[17].mxu1  ;;  %v1908_v61 = vpop.f32.mrb[17].mxu0  ;;  %v4844_v21 = vld [vmem:[#allocation2 + $0xa80] ss:$16 sps:$4 sm:$0xff]  }
 0x509   :  { %v1868_v62 = vadd.f32 %v1867_v60, %v5082_v8  ;;  %v1909_v63 = vadd.f32 %v1908_v61, %v5084_v22  ;;  %v1869_v2 = vpop.f32.mrb[18].mxu1  ;;  %v1910_v0 = vpop.f32.mrb[18].mxu0  ;;  %v4845_v7 = vld [vmem:[#allocation2 + $0xba0] ss:$16 sps:$4 sm:$0xff]   ;;  %4152 = vmatpush3.bf16.msra.mxu0 %v4844_v21 }
 0x50a   :  { %v1870_v3 = vpop.f32.mrb[19].mxu1  ;;  %v1911_v4 = vpop.f32.mrb[19].mxu0  ;;  %v4846_v8 = vld [vmem:[#allocation2 + $0xaa0] ss:$16 sps:$4 sm:$0xff]   ;;  %4153 = vmatprep.subr.bf16.mxu0 %v4845_v7 }
 0x50b   :  { %v4847_v2 = vld [vmem:[#allocation2 + $0xbc0] ss:$16 sps:$4 sm:$0xff]   ;;  %v4851_v4 = vld [vmem:[#allocation2 + $0xb04] ss:$16 sps:$4 sm:$0xff]  }
 0x50c   :  { %v4848_v0 = vld [vmem:[#allocation2 + $0xac0] ss:$16 sps:$4 sm:$0xff]  }
 0x50d   :  { %4154 = vmatpush3.bf16.msra.mxu0 %v4846_v8  ;;  %v4850_v3 = vld [vmem:[#allocation2 + $0xae0] ss:$16 sps:$4 sm:$0xff]  }
 0x50e   :  { %4155 = vmatprep.subr.bf16.mxu0 %v4847_v2 }
 0x511   :  { %4156 = vmatpush3.bf16.msra.mxu0 %v4848_v0  ;;  %v3363_v0 = vld [vmem:[#allocation4 + $0x21] ss:$0 sm:$0xff] }
 0x512   :  { %4157 = vmatprep.subr.bf16.mxu0 %v4849_v1 }
 0x515   :  { %4158 = vmatpush3.bf16.msra.mxu0 %v4850_v3 }
 0x516   :  { %4165 = vmatprep.subr.bf16.mxu0 %v4851_v4 }
 0x547   :  { %v2335_v22 = vpop.f32.mrb[20].mxu1 }
 0x548   :  { %v2383_v23 = vadd.f32 %v2335_v22, %v1866_v58  ;;  %v2376_v24 = vpop.f32.mrb[20].mxu0  ;;  %v2337_v25 = vpop.f32.mrb[21].mxu1  ;;  %v4852_v22 = vld [vmem:[#allocation2 + $0xa04] ss:$16 sps:$4 sm:$0xff]  }
 0x549   :  { %v2385_v26 = vadd.f32 %v2376_v24, %v1907_v59  ;;  %v2384_v14 = vadd.f32 %v2337_v25, %v1868_v62  ;;  %v2378_v27 = vpop.f32.mrb[21].mxu0  ;;  %v2339_v28 = vpop.f32.mrb[22].mxu1  ;;  %v4854_v24 = vld [vmem:[#allocation2 + $0xa24] ss:$16 sps:$4 sm:$0xff]  }
 0x54a   :  { %v2386_v12 = vadd.f32 %v2378_v27, %v1909_v63  ;;  %v2380_v29 = vpop.f32.mrb[22].mxu0  ;;  %v2340_v32 = vpop.f32.mrb[23].mxu1  ;;  %v4855_v25 = vld [vmem:[#allocation2 + $0xb44] ss:$16 sps:$4 sm:$0xff]  }
 0x54b   :  { %v2381_v34 = vpop.f32.mrb[23].mxu0  ;;  %v4858_v27 = vld [vmem:[#allocation2 + $0xa64] ss:$16 sps:$4 sm:$0xff]  }
 0x54c   :  { %v4859_v28 = vld [vmem:[#allocation2 + $0xb84] ss:$16 sps:$4 sm:$0xff]  }
 0x54d   :  { %v4861_v29 = vld [vmem:[#allocation2 + $0xba4] ss:$16 sps:$4 sm:$0xff]  }
 0x54e   :  { %v4862_v32 = vld [vmem:[#allocation2 + $0xaa4] ss:$16 sps:$4 sm:$0xff]  }
 0x54f   :  { %v4863_v34 = vld [vmem:[#allocation2 + $0xbc4] ss:$16 sps:$4 sm:$0xff]  }
 0x587   :  { %v2809_v39 = vpop.f32.mrb[24].mxu1 }
 0x588   :  { %v2857_v42 = vadd.f32 %v2809_v39, %v2383_v23  ;;  %v2850_v43 = vpop.f32.mrb[24].mxu0  ;;  %v2811_v44 = vpop.f32.mrb[25].mxu1  ;;  %v4853_v23 = vld [vmem:[#allocation2 + $0xb24] ss:$16 sps:$4 sm:$0xff]  }
 0x589   :  { %v2859_v46 = vadd.f32 %v2850_v43, %v2385_v26  ;;  %v2858_v47 = vadd.f32 %v2811_v44, %v2384_v14  ;;  %v2852_v48 = vpop.f32.mrb[25].mxu0  ;;  %v2813_v49 = vpop.f32.mrb[26].mxu1  ;;  %v4856_v26 = vld [vmem:[#allocation2 + $0xa44] ss:$16 sps:$4 sm:$0xff]   ;;  %v4869_v43 = vld [vmem:[#allocation2 + $0xb28] ss:$16 sps:$4 sm:$0xff]  }
 0x58a   :  { %v2884_v50 = vadd.f32 %v2867_v38, %v2857_v42  ;;  %v2860_v52 = vadd.f32 %v2852_v48, %v2386_v12  ;;  %v2854_v53 = vpop.f32.mrb[26].mxu0  ;;  %v2814_v54 = vpop.f32.mrb[27].mxu1  ;;  %v4857_v14 = vld [vmem:[#allocation2 + $0xb64] ss:$16 sps:$4 sm:$0xff]   ;;  %v4868_v42 = vld [vmem:[#allocation2 + $0xa08] ss:$16 sps:$4 sm:$0xff]  }
 0x58b   :  { %v5094_v55 = vadd.f32 %v2875_v40, %v2859_v46  ;;  %v2885_v30 = vadd.f32 %v2871_v41, %v2858_v47  ;;  %v2855_v56 = vpop.f32.mrb[27].mxu0  ;;  %v4860_v12 = vld [vmem:[#allocation2 + $0xa84] ss:$16 sps:$4 sm:$0xff]   ;;  %v4867_v41 = vld [vmem:[#allocation2 + $0xb08] ss:$16 sps:$4 sm:$0xff]  }
 0x58c   :  { %vm2888_vm11 = vcmp.gt.f32.partialorder %v2884_v50, 0.0  ;;  %v2892_v57 = vmul.f32 0.01, %v2884_v50  ;;  %v2887_v58 = vadd.f32 %v2879_v45, %v2860_v52  ;;  %v4866_v38 = vld [vmem:[#allocation2 + $0xae4] ss:$16 sps:$4 sm:$0xff]   ;;  %4187 = vmatprep.subr.bf16.mxu1 %v4867_v41 }
 0x58d   :  { %v2893_v59 = vmul.f32 0.01, %v2885_v30  ;;  %vm2889_vm12 = vcmp.gt.f32.partialorder %v2885_v30, 0.0  ;;  %v2894_v37 = vmul.f32 0.01, %v5094_v55  ;;  %vm2890_vm0 = vcmp.gt.f32.partialorder %v5094_v55, 0.0 }
 0x58e   :  { %v2896_v60 = vsel %vm2888_vm11, %v2884_v50, %v2892_v57  ;;  %v2895_v10 = vmul.f32 0.01, %v2887_v58  ;;  %vm2891_vm14 = vcmp.gt.f32.partialorder %v2887_v58, 0.0  ;;  %v4870_v44 = vld [vmem:[#allocation2 + $0xa28] ss:$16 sps:$4 sm:$0xff]  }
 0x58f   :  { %v2897_v61 = vsel %vm2889_vm12, %v2885_v30, %v2893_v59  ;;  %v2900_v63 = vpack.c.bf16 %v2896_v60, %v2896_v60  ;;  %v2898_v39 = vsel %vm2890_vm0, %v5094_v55, %v2894_v37  ;;  %v4871_v45 = vld [vmem:[#allocation2 + $0xb48] ss:$16 sps:$4 sm:$0xff]  }
 0x590   :  { %v2901_v62 = vpack.c.bf16 %v2897_v61, %v2897_v61  ;;  %v2899_v7 = vsel %vm2891_vm14, %v2887_v58, %v2895_v10  ;;  %v2902_v40 = vpack.c.bf16 %v2898_v39, %v2898_v39  ;;  %v4872_v46 = vld [vmem:[#allocation2 + $0xa48] ss:$16 sps:$4 sm:$0xff]  }
 0x591   :  { %v2903_v33 = vpack.c.bf16 %v2899_v7, %v2899_v7  ;;  %v4873_v47 = vld [vmem:[#allocation2 + $0xb68] ss:$16 sps:$4 sm:$0xff]  }
 0x592   :  { %3141 = vmatprep.mubr.bf16.mxu1 %v2901_v62  ;;  %v4874_v48 = vld [vmem:[#allocation2 + $0xa68] ss:$16 sps:$4 sm:$0xff]   ;;  %v3190_v62 = vld [vmem:[#allocation4 + $0x20] ss:$0 sm:$0xff] }
 0x593   :  { %3142 = vmatmul.mubr.bf16.vlgmr.msra.gmra.mrb[28].mxu1 %v2900_v63  ;;  %v4875_v49 = vld [vmem:[#allocation2 + $0xb88] ss:$16 sps:$4 sm:$0xff]  }
 0x594   :  { %4188 = vmatpush3.bf16.msra.mxu1 %v4868_v42  ;;  %v4876_v50 = vld [vmem:[#allocation2 + $0xa88] ss:$16 sps:$4 sm:$0xff]  }
 0x595   :  { %4189 = vmatprep.subr.bf16.mxu1 %v4869_v43  ;;  %v4877_v52 = vld [vmem:[#allocation2 + $0xba8] ss:$16 sps:$4 sm:$0xff]  }
 0x596   :  { %v4878_v53 = vld [vmem:[#allocation2 + $0xaa8] ss:$16 sps:$4 sm:$0xff]  }
 0x597   :  { %v4879_v54 = vld [vmem:[#allocation2 + $0xbc8] ss:$16 sps:$4 sm:$0xff]  }
 0x598   :  { %4190 = vmatpush3.bf16.msra.mxu1 %v4870_v44  ;;  %v4880_v55 = vld [vmem:[#allocation2 + $0xac8] ss:$16 sps:$4 sm:$0xff]  }
 0x599   :  { %4191 = vmatprep.subr.bf16.mxu1 %v4871_v45  ;;  %v4881_v30 = vld [vmem:[#allocation2 + $0xbe8] ss:$16 sps:$4 sm:$0xff]  }
 0x59a   :  { %v4882_v56 = vld [vmem:[#allocation2 + $0xae8] ss:$16 sps:$4 sm:$0xff]  }
 0x59c   :  { %4192 = vmatpush3.bf16.msra.mxu1 %v4872_v46 }
 0x59d   :  { %4193 = vmatprep.subr.bf16.mxu1 %v4873_v47 }
 0x5a0   :  { %4194 = vmatpush3.bf16.msra.mxu1 %v4874_v48 }
 0x5a1   :  { %4195 = vmatprep.subr.bf16.mxu1 %v4875_v49 }
 0x5a4   :  { %4196 = vmatpush3.bf16.msra.mxu1 %v4876_v50 }
 0x5a5   :  { %4197 = vmatprep.subr.bf16.mxu1 %v4877_v52 }
 0x5a8   :  { %4198 = vmatpush3.bf16.msra.mxu1 %v4878_v53 }
 0x5a9   :  { %4199 = vmatprep.subr.bf16.mxu1 %v4879_v54 }
 0x5ac   :  { %4200 = vmatpush3.bf16.msra.mxu1 %v4880_v55 }
 0x5ad   :  { %4201 = vmatprep.subr.bf16.mxu1 %v4881_v30 }
 0x5b0   :  { %4202 = vmatpush3.bf16.msra.mxu1 %v4882_v56 }
 0x666   :  { %v3143_v13 = vpop.f32.mrb[28].mxu1 }
 0x667   :  { %v3144_v15 = vadd.f32 %v3143_v13, %v2942_v6  ;;  %v3145_v9 = vpop.f32.mrb[29].mxu1 }
 0x668   :  { %v3146_v51 = vadd.f32 %v3145_v9, %v2946_v11  ;;  %v3147_v16 = vpop.f32.mrb[30].mxu1 }
 0x669   :  { %vm3150_vm13 = vcmp.gt.f32.partialorder %v3144_v15, 0.0  ;;  %v3152_v17 = vmul.f32 0.01, %v3144_v15  ;;  %v3148_v18 = vpop.f32.mrb[31].mxu1 }
 0x66a   :  { %vm3151_vm15 = vcmp.gt.f32.partialorder %v3146_v51, 0.0  ;;  %v3153_v19 = vmul.f32 0.01, %v3146_v51 }
 0x66b   :  { %v3154_v20 = vsel %vm3150_vm13, %v3144_v15, %v3152_v17  ;;  %v3536_v17 = vld [vmem:[#allocation4 + $0x22] ss:$0 sm:$0xff] }
 0x66c   :  { %v3155_v21 = vsel %vm3151_vm15, %v3146_v51, %v3153_v19  ;;  %v3156_v31 = vpack.c.bf16 %v3154_v20, %v3154_v20 }
 0x66d   :  { %v3157_v8 = vpack.c.bf16 %v3155_v21, %v3155_v21 }
 0x66f   :  { %3319 = vmatprep.mubr.bf16.mxu0 %v3157_v8 }
 0x670   :  { %3320 = vmatmul.mubr.bf16.vlgmr.msra.gmra.mrb[28].mxu0 %v3156_v31 }
 0x671   :  { %4166 = vmatpush3.bf16.msra.mxu0 %v4852_v22  ;;  %3492 = vmatprep.mubr.bf16.mxu0 %v2903_v33 }
 0x672   :  { %4167 = vmatprep.subr.bf16.mxu0 %v4853_v23 }
 0x675   :  { %4168 = vmatpush3.bf16.msra.mxu0 %v4854_v24 }
 0x676   :  { %4169 = vmatprep.subr.bf16.mxu0 %v4855_v25 }
 0x679   :  { %4170 = vmatpush3.bf16.msra.mxu0 %v4856_v26 }
 0x67a   :  { %4171 = vmatprep.subr.bf16.mxu0 %v4857_v14 }
 0x67d   :  { %4172 = vmatpush3.bf16.msra.mxu0 %v4858_v27 }
 0x67e   :  { %4173 = vmatprep.subr.bf16.mxu0 %v4859_v28 }
 0x681   :  { %4174 = vmatpush3.bf16.msra.mxu0 %v4860_v12 }
 0x682   :  { %4175 = vmatprep.subr.bf16.mxu0 %v4861_v29 }
 0x685   :  { %4176 = vmatpush3.bf16.msra.mxu0 %v4862_v32 }
 0x686   :  { %4177 = vmatprep.subr.bf16.mxu0 %v4863_v34 }
 0x689   :  { %4178 = vmatpush3.bf16.msra.mxu0 %v4864_v35 }
 0x68a   :  { %4179 = vmatprep.subr.bf16.mxu0 %v4865_v36 }
 0x68d   :  { %4180 = vmatpush3.bf16.msra.mxu0 %v4866_v38 }
 0x690   :  { %3493 = vmatmul.mubr.bf16.vlgmr.msra.gmra.mrb[32].mxu0 %v2902_v40 }
 0x743   :  { %v4159_v57 = vpop.f32.mrb[28].mxu0 }
 0x744   :  { %v4160_v58 = vpop.f32.mrb[29].mxu0 }
 0x745   :  { %v4161_v59 = vadd.f32 %v4160_v58, %v4159_v57  ;;  %v4162_v60 = vpop.f32.mrb[30].mxu0 }
 0x746   :  { %v4163_v61 = vpop.f32.mrb[31].mxu0 }
 0x747   :  { %v3322_v63 = vadd.f32 %v4161_v59, %v3190_v62 }
 0x749   :  { %v3328_v5 = vmul.f32 0.01, %v3322_v63  ;;  %vm3327_vm1 = vcmp.gt.f32.partialorder %v3322_v63, 0.0 }
 0x74b   :  { %v3329_v15 = vsel %vm3327_vm1, %v3322_v63, %v3328_v5 }
 0x74c   :  { %v3330_v51 = vpack.c.bf16 %v3329_v15, %v3329_v15 }
 0x763   :  { %v4181_v2 = vpop.f32.mrb[32].mxu0 }
 0x764   :  { %v4182_v1 = vpop.f32.mrb[33].mxu0 }
 0x765   :  { %v4183_v3 = vadd.f32 %v4182_v1, %v4181_v2  ;;  %v4184_v4 = vpop.f32.mrb[34].mxu0 }
 0x766   :  { %v4185_v6 = vpop.f32.mrb[35].mxu0 }
 0x767   :  { %v3495_v11 = vadd.f32 %v4183_v3, %v3363_v0 }
 0x769   :  { %v3501_v13 = vmul.f32 0.01, %v3495_v11  ;;  %vm3500_vm2 = vcmp.gt.f32.partialorder %v3495_v11, 0.0 }
 0x76b   :  { %v3502_v9 = vsel %vm3500_vm2, %v3495_v11, %v3501_v13 }
 0x76c   :  { %v3503_v10 = vpack.c.bf16 %v3502_v9, %v3502_v9 }
 0x76e   :  { %3665 = vmatprep.mubr.bf16.mxu1 %v3503_v10 }
 0x76f   :  { %3666 = vmatmul.mubr.bf16.vlgmr.msra.gmra.mrb[32].mxu1 %v3330_v51 }
 0x842   :  { %v4203_v16 = vpop.f32.mrb[32].mxu1 }
 0x843   :  { %v4204_v18 = vpop.f32.mrb[33].mxu1 }
 0x844   :  { %v4205_v19 = vadd.f32 %v4204_v18, %v4203_v16  ;;  %v4206_v20 = vpop.f32.mrb[34].mxu1 }
 0x845   :  { %v4207_v21 = vpop.f32.mrb[35].mxu1 }
 0x846   :  { %v3668_v7 = vadd.f32 %v4205_v19, %v3536_v17 }
 0x848   :  { %3673 = vst [vmem:[%s5109_s5] sm:$0xff] %v3668_v7 }
 0x849   :  { %3678 = vsyncpa [#allocation3], 1 }
 0x84a   :  { %3679 = vsyncpa [#allocation5], 1 }

</bundles_post_ra>
